<compile_context>
chip_gen: v6e
topology: v6e:2x2x1
jax: 0.10.0
libtpu: 0.0.40
codegen_flags: <defaults>
</compile_context>

<pallas_src>
import functools
import math

import jax
import jax.numpy as jnp
from jax.experimental import pallas as pl
from jax.experimental.pallas import tpu as pltpu


def _round_up(n, m):
    return ((n + m - 1) // m) * m


def _cdiv(a, b):
    return (a + b - 1) // b


def attention_critic_kernel(state_ref, action_ref,
                            w_qkv_ref, b_qkv_ref,
                            sum_pairs_ref, grp_ref, expand_ref, fold_ref,
                            w1_ref, b1_ref, w2_ref, b2_ref, w3_ref, b3_ref,
                            o_ref, *, num_agents, local_state_dim):
    """Fused forward for one (bb,)-sized batch tile.

    state_ref : (bb, A*E)   bf16
    action_ref: (bb, act)   bf16
    w_qkv     : (A*E, 3*P)  bf16, P = A*A*E pair-expanded lanes
    sum_pairs / grp / expand / fold: constant 0/1 bf16 matrices that implement
    the packed score reduction, softmax group-sum, weight expansion and the
    fold over key agents, all on the MXU.
    """
    A, E = num_agents, local_state_dim
    P = A * A * E
    scale = 1.0 / math.sqrt(float(E))

    def mm(x, w_ref):
        # MXU matmul: bf16 operands, f32 accumulation.
        w = w_ref[...]
        return jnp.dot(x.astype(w.dtype), w, preferred_element_type=jnp.float32)

    # Fused, lane-replicated Q/K/V projection: one push covers all agents/pairs.
    qkv = mm(state_ref[...], w_qkv_ref) + b_qkv_ref[...]          # (bb, 3P) f32
    q_rep = qkv[:, :P]                                            # q_i[e] at lane i*A*E+j*E+e
    k_rep = qkv[:, P:2 * P]                                       # k_j[e] at same lane
    v_rep = qkv[:, 2 * P:]                                        # v_j[e] at same lane

    # All A*A attention scores, lane-packed as (bb, A*A).
    prod = q_rep * k_rep                                          # (bb, P)  VPU
    scores = mm(prod, sum_pairs_ref) * scale                      # (bb, A*A)

    # Softmax over key agents (groups of A lanes).  Row-wide max is a valid
    # (and stable) shift for every group; exp goes to the EUP once.
    m = jnp.max(scores, axis=-1, keepdims=True)                   # (bb, 1)
    pexp = jnp.exp(scores - m)                                     # (bb, A*A)
    denom = mm(pexp, grp_ref)                                      # per-group sum, broadcast
    w_attn = pexp * pl.reciprocal(denom, approx=True)              # (bb, A*A)

    # Context: expand weights to pair lanes, weight V, fold over key agents.
    w_pair = mm(w_attn, expand_ref)                                # (bb, P)
    ctx = mm(w_pair * v_rep, fold_ref)                             # (bb, A*E) agent-major

    # fc1 (attention out-projection pre-folded into the weights) as ONE matmul
    # on the lane-concatenated [action | ctx] operand.
    cat = jnp.concatenate([action_ref[...].astype(jnp.float32), ctx], axis=-1)
    h1 = jnp.maximum(mm(cat, w1_ref) + b1_ref[...], 0.0)           # (bb, H1P)
    h2 = jnp.maximum(mm(h1, w2_ref) + b2_ref[...], 0.0)            # (bb, H2P)
    out = mm(h2, w3_ref) + b3_ref[...]                             # (bb, 8) lane-padded
    o_ref[...] = out[:, :1].astype(o_ref.dtype)                    # only column 0 is real


@functools.partial(jax.jit,
                   static_argnames=("num_agents", "local_state_dim", "block_b"))
def attention_critic_forward(state, action, kparams, *, num_agents,
                             local_state_dim, block_b=1024):
    """state: (B, num_agents*local_state_dim), action: (B, act_dim) -> (B, 1)."""
    B = state.shape[0]
    A, E = num_agents, local_state_dim
    AE = A * E
    P = A * A * E
    act_dim = action.shape[1]
    h1p = kparams["b1"].shape[1]
    h2p = kparams["b2"].shape[1]
    outp = kparams["b3"].shape[1]

    # bf16 activations halve HBM traffic; matmul numerics are unchanged because
    # operands are cast to bf16 in-kernel anyway.
    state = state.astype(jnp.bfloat16)
    action = action.astype(jnp.bfloat16)

    # Batch tile: as large as possible (amortizes the ~0.35us per-grid-step
    # overhead), multiple of 128, and >= 2 grid steps when B allows so the
    # "parallel" axis can shard across both TensorCores on v7x.
    if B <= 256:
        bb = B
    else:
        half = _round_up(_cdiv(B, 2), 128)
        bb = max(128, (min(block_b, half) // 128) * 128)
    grid = (_cdiv(B, bb),)

    out = pl.pallas_call(
        functools.partial(attention_critic_kernel, num_agents=A,
                          local_state_dim=E),
        out_shape=jax.ShapeDtypeStruct((B, 1), jnp.float32),
        grid=grid,
        in_specs=[
            pl.BlockSpec((bb, AE), lambda i: (i, 0)),              # state
            pl.BlockSpec((bb, act_dim), lambda i: (i, 0)),         # action
            pl.BlockSpec((AE, 3 * P), lambda i: (0, 0)),           # fused QKV weight
            pl.BlockSpec((1, 3 * P), lambda i: (0, 0)),            # fused QKV bias
            pl.BlockSpec((P, A * A), lambda i: (0, 0)),            # pair-sum matrix
            pl.BlockSpec((A * A, A * A), lambda i: (0, 0)),        # group-sum matrix
            pl.BlockSpec((A * A, P), lambda i: (0, 0)),            # expand matrix
            pl.BlockSpec((P, AE), lambda i: (0, 0)),               # fold matrix
            pl.BlockSpec((act_dim + AE, h1p), lambda i: (0, 0)),   # fused fc1 weight
            pl.BlockSpec((1, h1p), lambda i: (0, 0)),              # fused fc1 bias
            pl.BlockSpec((h1p, h2p), lambda i: (0, 0)),            # fc2 weight
            pl.BlockSpec((1, h2p), lambda i: (0, 0)),              # fc2 bias
            pl.BlockSpec((h2p, outp), lambda i: (0, 0)),           # fc3 weight (8-lane)
            pl.BlockSpec((1, outp), lambda i: (0, 0)),             # fc3 bias
        ],
        out_specs=pl.BlockSpec((bb, 1), lambda i: (i, 0)),
        compiler_params=pltpu.CompilerParams(
            dimension_semantics=("parallel",)),
    )(state, action,
      kparams["w_qkv"], kparams["b_qkv"],
      kparams["sum_pairs"], kparams["grp"], kparams["expand"], kparams["fold"],
      kparams["w1"], kparams["b1"], kparams["w2"], kparams["b2"],
      kparams["w3"], kparams["b3"])
    return out


def init_attention_critic_params(key, total_state_dim, total_action_dim,
                                 num_agents, local_state_dim):
    """Deterministic init. PyTorch-convention shapes: Linear weights are
    [out_features, in_features]; attention wq/wk/wv/wo are [E, E]."""
    E = local_state_dim
    in_dim = total_state_dim + total_action_dim

    def unif(k, shape, fan_in):
        bound = 1.0 / math.sqrt(float(fan_in))
        return jax.random.uniform(k, shape, jnp.float32, minval=-bound, maxval=bound)

    p = {}
    for name in ("q", "k", "v", "o"):
        key, kw, kb = jax.random.split(key, 3)
        p[f"w{name}"] = unif(kw, (E, E), E)
        p[f"b{name}"] = unif(kb, (E,), E)
    for idx, (fan_out, fan_in) in enumerate(((200, in_dim), (400, 200), (1, 400)),
                                            start=1):
        key, kw, kb = jax.random.split(key, 3)
        p[f"w{idx}"] = unif(kw, (fan_out, fan_in), fan_in)
        p[f"b{idx}"] = unif(kb, (fan_out,), fan_in)
    return p


def prepare_params(p, num_agents, local_state_dim, matmul_dtype=jnp.bfloat16):
    """Host-side weight preparation: fused lane-replicated QKV projection,
    constant 0/1 helper matrices for the packed attention, wo/bo folded into a
    single fc1 weight, zero-padding of fc widths to multiples of 128, bf16
    pre-cast of every matmul weight (biases stay f32)."""
    A, E = num_agents, local_state_dim
    AE = A * E
    P = A * A * E
    md = matmul_dtype
    f32 = jnp.float32

    h1, h2, out_dim = p["b1"].shape[0], p["b2"].shape[0], p["b3"].shape[0]
    h1p, h2p = _round_up(h1, 128), _round_up(h2, 128)
    outp = 8                                    # tiny lane pad; only column 0 is real

    wqT, wkT, wvT, woT = p["wq"].T, p["wk"].T, p["wv"].T, p["wo"].T   # (E,E) in->out

    # Pair-expanded lane c = i*(A*E) + j*E + e  (i = query agent, j = key agent).
    c = jnp.arange(P)
    i_idx, j_idx, e_idx = c // (A * E), (c // E) % A, c % E
    r = jnp.arange(AE)
    ar, er = r // E, r % E

    def replicated(wT, agent_of_col):
        vals = wT[er[:, None], e_idx[None, :]]                        # (AE, P)
        return jnp.where(ar[:, None] == agent_of_col[None, :], vals, 0.0)

    w_qkv = jnp.concatenate(
        [replicated(wqT, i_idx), replicated(wkT, j_idx), replicated(wvT, j_idx)],
        axis=1).astype(md)                                            # (AE, 3P)
    b_qkv = jnp.concatenate(
        [p["bq"][e_idx], p["bk"][e_idx], p["bv"][e_idx]]).reshape(1, 3 * P).astype(f32)

    # Constant 0/1 matrices driving the packed softmax / context on the MXU.
    pair = c // E                                 # pair index i*A + j of lane c
    q = jnp.arange(A * A)
    sum_pairs = (pair[:, None] == q[None, :]).astype(md)              # (P, A*A)
    grp = (q[:, None] // A == q[None, :] // A).astype(md)             # (A*A, A*A)
    expand = (q[:, None] == pair[None, :]).astype(md)                 # (A*A, P)
    out_lane = jnp.arange(AE)
    fold = ((i_idx[:, None] * E + e_idx[:, None])
            == out_lane[None, :]).astype(md)                          # (P, AE)

    # fc1 with the attention output projection (wo, bo) folded in; operand order
    # in-kernel is [action | ctx].
    w1T = p["w1"].T                                                   # (in_dim, h1)
    W1s = w1T[:AE, :].reshape(A, E, h1)                               # per-agent slabs
    W1a = w1T[AE:, :]                                                 # (act_dim, h1)
    W1ctx = jnp.einsum("ef,ifh->ieh", woT, W1s).reshape(AE, h1)
    b1f = p["b1"] + jnp.einsum("f,ifh->h", p["bo"], W1s)
    w1f = jnp.concatenate([W1a, W1ctx], axis=0)                       # (act_dim+AE, h1)

    kp = {
        "w_qkv": w_qkv, "b_qkv": b_qkv,
        "sum_pairs": sum_pairs, "grp": grp, "expand": expand, "fold": fold,
        "w1": jnp.pad(w1f, ((0, 0), (0, h1p - h1))).astype(md),
        "b1": jnp.pad(b1f, (0, h1p - h1)).reshape(1, h1p).astype(f32),
        "w2": jnp.pad(p["w2"].T, ((0, h1p - h1), (0, h2p - h2))).astype(md),
        "b2": jnp.pad(p["b2"], (0, h2p - h2)).reshape(1, h2p).astype(f32),
        "w3": jnp.pad(p["w3"].T, ((0, h2p - h2), (0, outp - out_dim))).astype(md),
        "b3": jnp.pad(p["b3"], (0, outp - out_dim)).reshape(1, outp).astype(f32),
    }
    return kp


def attention_critic_reference(state, action, p, num_agents,
                               matmul_dtype=jnp.bfloat16):
    """Plain-JAX reference mirroring the module semantics with the same
    bf16-operand / f32-accumulate matmuls."""
    B = state.shape[0]
    E = p["wq"].shape[0]
    md = matmul_dtype
    f32 = jnp.float32

    s = state.reshape(B, num_agents, E)
    q = jnp.einsum("bae,fe->baf", s.astype(md), p["wq"].astype(md),
                   preferred_element_type=f32) + p["bq"]
    k = jnp.einsum("bae,fe->baf", s.astype(md), p["wk"].astype(md),
                   preferred_element_type=f32) + p["bk"]
    v = jnp.einsum("bae,fe->baf", s.astype(md), p["wv"].astype(md),
                   preferred_element_type=f32) + p["bv"]
    scores = jnp.einsum("bie,bje->bij", q, k,
                        preferred_element_type=f32) / math.sqrt(float(E))
    attn = jax.nn.softmax(scores, axis=-1)
    ctx = jnp.einsum("bij,bje->bie", attn, v, preferred_element_type=f32)
    attn_out = jnp.einsum("bae,fe->baf", ctx.astype(md), p["wo"].astype(md),
                          preferred_element_type=f32) + p["bo"]

    x = jnp.concatenate([attn_out.reshape(B, -1), action], axis=1)
    h1 = jax.nn.relu(jnp.dot(x.astype(md), p["w1"].T.astype(md),
                             preferred_element_type=f32) + p["b1"])
    h2 = jax.nn.relu(jnp.dot(h1.astype(md), p["w2"].T.astype(md),
                             preferred_element_type=f32) + p["b2"])
    return jnp.dot(h2.astype(md), p["w3"].T.astype(md),
                   preferred_element_type=f32) + p["b3"]


if __name__ == "__main__":
    key = jax.random.PRNGKey(0)
    num_agents, local_state_dim = 4, 8
    total_state_dim = num_agents * local_state_dim        # 32
    total_action_dim = 8

    key, kparams_key = jax.random.split(key)
    params = init_attention_critic_params(
        kparams_key, total_state_dim, total_action_dim, num_agents, local_state_dim)
    kparams = prepare_params(params, num_agents, local_state_dim,
                             matmul_dtype=jnp.bfloat16)

    # batch=64 exercises the single-tile path; batch=512 exercises the
    # multi-tile (2 grid steps, megacore-shardable) path.
    for batch in (64, 512):
        key, kstate, kaction = jax.random.split(key, 3)
        state = jax.random.normal(kstate, (batch, total_state_dim), jnp.float32)
        action = jax.random.normal(kaction, (batch, total_action_dim), jnp.float32)

        out = attention_critic_forward(state, action, kparams,
                                       num_agents=num_agents,
                                       local_state_dim=local_state_dim)
        out = jax.block_until_ready(out)

        ref = attention_critic_reference(state, action, params, num_agents,
                                         matmul_dtype=jnp.bfloat16)
        assert out.shape == (batch, 1), out.shape
        max_err = float(jnp.max(jnp.abs(out - ref)))
        assert jnp.allclose(out, ref, atol=2e-2, rtol=2e-2), \
            f"batch={batch}: mismatch vs reference (max err {max_err})"
    print("KERNEL_OK")
</pallas_src>

<mosaic_0001>
module attributes {stable_mosaic.version = 11 : i64} {
  func.func @attention_critic_kernel(%arg0: i32, %arg1: memref<64x32xbf16, #tpu.memory_space<vmem>>, %arg2: memref<64x8xbf16, #tpu.memory_space<vmem>>, %arg3: memref<32x384xbf16, #tpu.memory_space<vmem>>, %arg4: memref<1x384xf32, #tpu.memory_space<vmem>>, %arg5: memref<128x16xbf16, #tpu.memory_space<vmem>>, %arg6: memref<16x16xbf16, #tpu.memory_space<vmem>>, %arg7: memref<16x128xbf16, #tpu.memory_space<vmem>>, %arg8: memref<128x32xbf16, #tpu.memory_space<vmem>>, %arg9: memref<40x256xbf16, #tpu.memory_space<vmem>>, %arg10: memref<1x256xf32, #tpu.memory_space<vmem>>, %arg11: memref<256x512xbf16, #tpu.memory_space<vmem>>, %arg12: memref<1x512xf32, #tpu.memory_space<vmem>>, %arg13: memref<512x8xbf16, #tpu.memory_space<vmem>>, %arg14: memref<1x8xf32, #tpu.memory_space<vmem>>, %arg15: memref<64x1xf32, #tpu.memory_space<vmem>>) attributes {dimension_semantics = [#tpu.dimension_semantics<parallel>], iteration_bounds = array<i64: 1>, scalar_prefetch = 0 : i64, scratch_operands = 0 : i64, tpu.core_type = #tpu.core_type<tc>, window_params = [{transform_indices = @transform_0, window_bounds = array<i64: 64, 32>}, {transform_indices = @transform_1, window_bounds = array<i64: 64, 8>}, {pipeline_mode = #tpu.pipeline_mode<synchronous>, transform_indices = @transform_2, window_bounds = array<i64: 32, 384>}, {pipeline_mode = #tpu.pipeline_mode<synchronous>, transform_indices = @transform_3, window_bounds = array<i64: 1, 384>}, {pipeline_mode = #tpu.pipeline_mode<synchronous>, transform_indices = @transform_4, window_bounds = array<i64: 128, 16>}, {pipeline_mode = #tpu.pipeline_mode<synchronous>, transform_indices = @transform_5, window_bounds = array<i64: 16, 16>}, {pipeline_mode = #tpu.pipeline_mode<synchronous>, transform_indices = @transform_6, window_bounds = array<i64: 16, 128>}, {pipeline_mode = #tpu.pipeline_mode<synchronous>, transform_indices = @transform_7, window_bounds = array<i64: 128, 32>}, {pipeline_mode = #tpu.pipeline_mode<synchronous>, transform_indices = @transform_8, window_bounds = array<i64: 40, 256>}, {pipeline_mode = #tpu.pipeline_mode<synchronous>, transform_indices = @transform_9, window_bounds = array<i64: 1, 256>}, {pipeline_mode = #tpu.pipeline_mode<synchronous>, transform_indices = @transform_10, window_bounds = array<i64: 256, 512>}, {pipeline_mode = #tpu.pipeline_mode<synchronous>, transform_indices = @transform_11, window_bounds = array<i64: 1, 512>}, {pipeline_mode = #tpu.pipeline_mode<synchronous>, transform_indices = @transform_12, window_bounds = array<i64: 512, 8>}, {pipeline_mode = #tpu.pipeline_mode<synchronous>, transform_indices = @transform_13, window_bounds = array<i64: 1, 8>}, {transform_indices = @transform_14, window_bounds = array<i64: 64, 1>}]} {
    %c0 = arith.constant 0 : index
    %c0_0 = arith.constant 0 : index
    %0 = vector.load %arg1[%c0, %c0_0] : memref<64x32xbf16, #tpu.memory_space<vmem>>, vector<64x32xbf16>
    %c0_1 = arith.constant 0 : index
    %c0_2 = arith.constant 0 : index
    %1 = vector.load %arg3[%c0_1, %c0_2] : memref<32x384xbf16, #tpu.memory_space<vmem>>, vector<32x384xbf16>
    %cst = arith.constant dense<0.000000e+00> : vector<64x384xf32>
    %2 = tpu.matmul %0, %1, %cst {dimension_numbers = #tpu.dot_dimension_numbers<[1], [0], [0], [1], [0, 0, 1, 1], [], []>} : vector<64x32xbf16>, vector<32x384xbf16>, vector<64x384xf32> -> vector<64x384xf32>
    %c0_3 = arith.constant 0 : index
    %c0_4 = arith.constant 0 : index
    %3 = vector.load %arg4[%c0_3, %c0_4] : memref<1x384xf32, #tpu.memory_space<vmem>>, vector<1x384xf32>
    %4 = vector.broadcast %3 : vector<1x384xf32> to vector<64x384xf32>
    %5 = arith.addf %2, %4 : vector<64x384xf32>
    %6 = vector.extract_strided_slice %5 {offsets = [0, 0], sizes = [64, 128], strides = [1, 1]} : vector<64x384xf32> to vector<64x128xf32>
    %7 = vector.extract_strided_slice %5 {offsets = [0, 128], sizes = [64, 128], strides = [1, 1]} : vector<64x384xf32> to vector<64x128xf32>
    %8 = vector.extract_strided_slice %5 {offsets = [0, 256], sizes = [64, 128], strides = [1, 1]} : vector<64x384xf32> to vector<64x128xf32>
    %9 = arith.mulf %6, %7 : vector<64x128xf32>
    %c0_5 = arith.constant 0 : index
    %c0_6 = arith.constant 0 : index
    %10 = vector.load %arg5[%c0_5, %c0_6] : memref<128x16xbf16, #tpu.memory_space<vmem>>, vector<128x16xbf16>
    %11 = arith.truncf %9 : vector<64x128xf32> to vector<64x128xbf16>
    %cst_7 = arith.constant dense<0.000000e+00> : vector<64x16xf32>
    %12 = tpu.matmul %11, %10, %cst_7 {dimension_numbers = #tpu.dot_dimension_numbers<[1], [0], [0], [1], [0, 0, 1, 1], [], []>} : vector<64x128xbf16>, vector<128x16xbf16>, vector<64x16xf32> -> vector<64x16xf32>
    %cst_8 = arith.constant 0.353553385 : f32
    %13 = vector.broadcast %cst_8 : f32 to vector<64x16xf32>
    %14 = arith.mulf %12, %13 : vector<64x16xf32>
    %cst_9 = arith.constant dense<0xFF800000> : vector<64xf32>
    %15 = vector.multi_reduction <maximumf>, %14, %cst_9 [1] : vector<64x16xf32> to vector<64xf32>
    %16 = vector.shape_cast %15 : vector<64xf32> to vector<64x1xf32>
    %17 = vector.broadcast %16 : vector<64x1xf32> to vector<64x16xf32>
    %18 = arith.subf %14, %17 : vector<64x16xf32>
    %19 = math.exp %18 : vector<64x16xf32>
    %c0_10 = arith.constant 0 : index
    %c0_11 = arith.constant 0 : index
    %20 = vector.load %arg6[%c0_10, %c0_11] : memref<16x16xbf16, #tpu.memory_space<vmem>>, vector<16x16xbf16>
    %21 = arith.truncf %19 : vector<64x16xf32> to vector<64x16xbf16>
    %cst_12 = arith.constant dense<0.000000e+00> : vector<64x16xf32>
    %22 = tpu.matmul %21, %20, %cst_12 {dimension_numbers = #tpu.dot_dimension_numbers<[1], [0], [0], [1], [0, 0, 1, 1], [], []>} : vector<64x16xbf16>, vector<16x16xbf16>, vector<64x16xf32> -> vector<64x16xf32>
    %23 = tpu.reciprocal %22 {approx = true} : vector<64x16xf32> -> vector<64x16xf32>
    %24 = arith.mulf %19, %23 : vector<64x16xf32>
    %c0_13 = arith.constant 0 : index
    %c0_14 = arith.constant 0 : index
    %25 = vector.load %arg7[%c0_13, %c0_14] : memref<16x128xbf16, #tpu.memory_space<vmem>>, vector<16x128xbf16>
    %26 = arith.truncf %24 : vector<64x16xf32> to vector<64x16xbf16>
    %cst_15 = arith.constant dense<0.000000e+00> : vector<64x128xf32>
    %27 = tpu.matmul %26, %25, %cst_15 {dimension_numbers = #tpu.dot_dimension_numbers<[1], [0], [0], [1], [0, 0, 1, 1], [], []>} : vector<64x16xbf16>, vector<16x128xbf16>, vector<64x128xf32> -> vector<64x128xf32>
    %28 = arith.mulf %27, %8 : vector<64x128xf32>
    %c0_16 = arith.constant 0 : index
    %c0_17 = arith.constant 0 : index
    %29 = vector.load %arg8[%c0_16, %c0_17] : memref<128x32xbf16, #tpu.memory_space<vmem>>, vector<128x32xbf16>
    %30 = arith.truncf %28 : vector<64x128xf32> to vector<64x128xbf16>
    %cst_18 = arith.constant dense<0.000000e+00> : vector<64x32xf32>
    %31 = tpu.matmul %30, %29, %cst_18 {dimension_numbers = #tpu.dot_dimension_numbers<[1], [0], [0], [1], [0, 0, 1, 1], [], []>} : vector<64x128xbf16>, vector<128x32xbf16>, vector<64x32xf32> -> vector<64x32xf32>
    %c0_19 = arith.constant 0 : index
    %c0_20 = arith.constant 0 : index
    %32 = vector.load %arg2[%c0_19, %c0_20] : memref<64x8xbf16, #tpu.memory_space<vmem>>, vector<64x8xbf16>
    %33 = arith.extf %32 : vector<64x8xbf16> to vector<64x8xf32>
    %34 = tpu.concatenate %33, %31 in 1 : vector<64x8xf32>, vector<64x32xf32> -> vector<64x40xf32>
    %c0_21 = arith.constant 0 : index
    %c0_22 = arith.constant 0 : index
    %35 = vector.load %arg9[%c0_21, %c0_22] : memref<40x256xbf16, #tpu.memory_space<vmem>>, vector<40x256xbf16>
    %36 = arith.truncf %34 : vector<64x40xf32> to vector<64x40xbf16>
    %cst_23 = arith.constant dense<0.000000e+00> : vector<64x256xf32>
    %37 = tpu.matmul %36, %35, %cst_23 {dimension_numbers = #tpu.dot_dimension_numbers<[1], [0], [0], [1], [0, 0, 1, 1], [], []>} : vector<64x40xbf16>, vector<40x256xbf16>, vector<64x256xf32> -> vector<64x256xf32>
    %c0_24 = arith.constant 0 : index
    %c0_25 = arith.constant 0 : index
    %38 = vector.load %arg10[%c0_24, %c0_25] : memref<1x256xf32, #tpu.memory_space<vmem>>, vector<1x256xf32>
    %39 = vector.broadcast %38 : vector<1x256xf32> to vector<64x256xf32>
    %40 = arith.addf %37, %39 : vector<64x256xf32>
    %cst_26 = arith.constant 0.000000e+00 : f32
    %41 = vector.broadcast %cst_26 : f32 to vector<64x256xf32>
    %42 = arith.maximumf %40, %41 : vector<64x256xf32>
    %c0_27 = arith.constant 0 : index
    %c0_28 = arith.constant 0 : index
    %43 = vector.load %arg11[%c0_27, %c0_28] : memref<256x512xbf16, #tpu.memory_space<vmem>>, vector<256x512xbf16>
    %44 = arith.truncf %42 : vector<64x256xf32> to vector<64x256xbf16>
    %cst_29 = arith.constant dense<0.000000e+00> : vector<64x512xf32>
    %45 = tpu.matmul %44, %43, %cst_29 {dimension_numbers = #tpu.dot_dimension_numbers<[1], [0], [0], [1], [0, 0, 1, 1], [], []>} : vector<64x256xbf16>, vector<256x512xbf16>, vector<64x512xf32> -> vector<64x512xf32>
    %c0_30 = arith.constant 0 : index
    %c0_31 = arith.constant 0 : index
    %46 = vector.load %arg12[%c0_30, %c0_31] : memref<1x512xf32, #tpu.memory_space<vmem>>, vector<1x512xf32>
    %47 = vector.broadcast %46 : vector<1x512xf32> to vector<64x512xf32>
    %48 = arith.addf %45, %47 : vector<64x512xf32>
    %cst_32 = arith.constant 0.000000e+00 : f32
    %49 = vector.broadcast %cst_32 : f32 to vector<64x512xf32>
    %50 = arith.maximumf %48, %49 : vector<64x512xf32>
    %c0_33 = arith.constant 0 : index
    %c0_34 = arith.constant 0 : index
    %51 = vector.load %arg13[%c0_33, %c0_34] : memref<512x8xbf16, #tpu.memory_space<vmem>>, vector<512x8xbf16>
    %52 = arith.truncf %50 : vector<64x512xf32> to vector<64x512xbf16>
    %cst_35 = arith.constant dense<0.000000e+00> : vector<64x8xf32>
    %53 = tpu.matmul %52, %51, %cst_35 {dimension_numbers = #tpu.dot_dimension_numbers<[1], [0], [0], [1], [0, 0, 1, 1], [], []>} : vector<64x512xbf16>, vector<512x8xbf16>, vector<64x8xf32> -> vector<64x8xf32>
    %c0_36 = arith.constant 0 : index
    %c0_37 = arith.constant 0 : index
    %54 = vector.load %arg14[%c0_36, %c0_37] : memref<1x8xf32, #tpu.memory_space<vmem>>, vector<1x8xf32>
    %55 = vector.broadcast %54 : vector<1x8xf32> to vector<64x8xf32>
    %56 = arith.addf %53, %55 : vector<64x8xf32>
    %57 = vector.extract_strided_slice %56 {offsets = [0, 0], sizes = [64, 1], strides = [1, 1]} : vector<64x8xf32> to vector<64x1xf32>
    %c0_38 = arith.constant 0 : index
    %c0_39 = arith.constant 0 : index
    %58 = vector.load %arg15[%c0_38, %c0_39] : memref<64x1xf32, #tpu.memory_space<vmem>>, vector<64x1xf32>
    tpu.vector_store %arg15[%c0_38, %c0_39], %57 {strides = array<i32>} : memref<64x1xf32, #tpu.memory_space<vmem>>, vector<64x1xf32>,
    return
  }
  func.func @transform_0(%arg0: i32) -> (i32, i32) {
    %c0_i32 = arith.constant 0 : i32
    %c0_i32_0 = arith.constant 0 : i32
    return %arg0, %c0_i32 : i32, i32
  }
  func.func @transform_1(%arg0: i32) -> (i32, i32) {
    %c0_i32 = arith.constant 0 : i32
    %c0_i32_0 = arith.constant 0 : i32
    return %arg0, %c0_i32 : i32, i32
  }
  func.func @transform_2(%arg0: i32) -> (i32, i32) {
    %c0_i32 = arith.constant 0 : i32
    %c0_i32_0 = arith.constant 0 : i32
    %c0_i32_1 = arith.constant 0 : i32
    return %c0_i32, %c0_i32_0 : i32, i32
  }
  func.func @transform_3(%arg0: i32) -> (i32, i32) {
    %c0_i32 = arith.constant 0 : i32
    %c0_i32_0 = arith.constant 0 : i32
    %c0_i32_1 = arith.constant 0 : i32
    return %c0_i32, %c0_i32_0 : i32, i32
  }
  func.func @transform_4(%arg0: i32) -> (i32, i32) {
    %c0_i32 = arith.constant 0 : i32
    %c0_i32_0 = arith.constant 0 : i32
    %c0_i32_1 = arith.constant 0 : i32
    return %c0_i32, %c0_i32_0 : i32, i32
  }
  func.func @transform_5(%arg0: i32) -> (i32, i32) {
    %c0_i32 = arith.constant 0 : i32
    %c0_i32_0 = arith.constant 0 : i32
    %c0_i32_1 = arith.constant 0 : i32
    return %c0_i32, %c0_i32_0 : i32, i32
  }
  func.func @transform_6(%arg0: i32) -> (i32, i32) {
    %c0_i32 = arith.constant 0 : i32
    %c0_i32_0 = arith.constant 0 : i32
    %c0_i32_1 = arith.constant 0 : i32
    return %c0_i32, %c0_i32_0 : i32, i32
  }
  func.func @transform_7(%arg0: i32) -> (i32, i32) {
    %c0_i32 = arith.constant 0 : i32
    %c0_i32_0 = arith.constant 0 : i32
    %c0_i32_1 = arith.constant 0 : i32
    return %c0_i32, %c0_i32_0 : i32, i32
  }
  func.func @transform_8(%arg0: i32) -> (i32, i32) {
    %c0_i32 = arith.constant 0 : i32
    %c0_i32_0 = arith.constant 0 : i32
    %c0_i32_1 = arith.constant 0 : i32
    return %c0_i32, %c0_i32_0 : i32, i32
  }
  func.func @transform_9(%arg0: i32) -> (i32, i32) {
    %c0_i32 = arith.constant 0 : i32
    %c0_i32_0 = arith.constant 0 : i32
    %c0_i32_1 = arith.constant 0 : i32
    return %c0_i32, %c0_i32_0 : i32, i32
  }
  func.func @transform_10(%arg0: i32) -> (i32, i32) {
    %c0_i32 = arith.constant 0 : i32
    %c0_i32_0 = arith.constant 0 : i32
    %c0_i32_1 = arith.constant 0 : i32
    return %c0_i32, %c0_i32_0 : i32, i32
  }
  func.func @transform_11(%arg0: i32) -> (i32, i32) {
    %c0_i32 = arith.constant 0 : i32
    %c0_i32_0 = arith.constant 0 : i32
    %c0_i32_1 = arith.constant 0 : i32
    return %c0_i32, %c0_i32_0 : i32, i32
  }
  func.func @transform_12(%arg0: i32) -> (i32, i32) {
    %c0_i32 = arith.constant 0 : i32
    %c0_i32_0 = arith.constant 0 : i32
    %c0_i32_1 = arith.constant 0 : i32
    return %c0_i32, %c0_i32_0 : i32, i32
  }
  func.func @transform_13(%arg0: i32) -> (i32, i32) {
    %c0_i32 = arith.constant 0 : i32
    %c0_i32_0 = arith.constant 0 : i32
    %c0_i32_1 = arith.constant 0 : i32
    return %c0_i32, %c0_i32_0 : i32, i32
  }
  func.func @transform_14(%arg0: i32) -> (i32, i32) {
    %c0_i32 = arith.constant 0 : i32
    %c0_i32_0 = arith.constant 0 : i32
    return %arg0, %c0_i32 : i32, i32
  }
}

</mosaic_0001>

<bundles_post_ra>
// kernel: attention_critic_forward.1
= control target key start
LH: loop header
LB: loop body
LE: loop exit
PB: predicated region body
PF: predicated region fallthrough
CT: control target
= control target key end

     0   :  { %19 = vsyncpa [#allocation3], 0  ;;  %s3578_s0 = inlined_call_operand.vmem [shape: bf16[64,32], index: 0, kind: input, shape index: {}]   ;;  %s3579_s1 = inlined_call_operand.vmem [shape: bf16[64,8], index: 1, kind: input, shape index: {}]   ;;  %s3580_s2 = inlined_call_operand.vmem [shape: bf16[32,384], index: 2, kind: input, shape index: {}]   ;;  %s3581_s3 = inlined_call_operand.hbm [shape: f32[1,384], index: 3, kind: input, shape index: {}]   ;;  %s3582_s4 = inlined_call_operand.vmem [shape: bf16[128,16], index: 4, kind: input, shape index: {}]   ;;  %s3583_s5 = inlined_call_operand.vmem [shape: bf16[16,16], index: 5, kind: input, shape index: {}]   ;;  %s3584_s6 = inlined_call_operand.hbm [shape: bf16[16,128], index: 6, kind: input, shape index: {}]   ;;  %s3585_s7 = inlined_call_operand.vmem [shape: bf16[128,32], index: 7, kind: input, shape index: {}]   ;;  %s3586_s8 = inlined_call_operand.hbm [shape: bf16[40,256], index: 8, kind: input, shape index: {}]   ;;  %s3587_s9 = inlined_call_operand.hbm [shape: f32[1,256], index: 9, kind: input, shape index: {}]   ;;  %s3588_s10 = inlined_call_operand.vmem [shape: bf16[256,512], index: 10, kind: input, shape index: {}]   ;;  %s3589_s11 = inlined_call_operand.vmem [shape: f32[1,512], index: 11, kind: input, shape index: {}]   ;;  %s3590_s12 = inlined_call_operand.vmem [shape: bf16[512,8], index: 12, kind: input, shape index: {}]   ;;  %s3591_s13 = inlined_call_operand.vmem [shape: f32[1,8], index: 13, kind: input, shape index: {}]   ;;  %s3592_s14 = inlined_call_operand.vmem [shape: f32[64,1], index: 14, kind: output, shape index: {}]  }
   0x1   :  { %20 = vsyncpa [#allocation5], 0 }
   0x2   :  { %21 = vsyncpa [#allocation8], 0  ;;  %s2797_s29 = smov [#allocation4]  }
   0x3   :  { %s47_s30 = sshll.u32 %s2797_s29, 4  ;;  %s48_s30 = int_to_ptr.vmem [resolvable:$true] %s47_s30 }
   0x4   :  { %s2719_s15 = scalar_lea.vmem %s48_s30, 128  ;;  %p2724_p1 = scmp.lt.s32.totalorder %s48_s30, %s48_s30 }
   0x5   :  { %p2720_p0 = scmp.ne.s32.totalorder %s48_s30, %s2719_s15  ;;  %p2725_p2 = scmp.lt.s32.totalorder %s2719_s15, %s2719_s15 }
   0x7   :  { %p2726_p3 = por %p2725_p2, %p2724_p1 }
   0x9   :  { %p2727_p4 = pnand %p2726_p3, %p2720_p0 }
   0xb   :  { %2730 = shalt.err (!%p2727_p4)
}
   0xc   :  { %s2798_s16 = smov 64   ;;  %s2799_s17 = smov 4  }
   0xd   :  { %53 = dma.hbm_to_vmem [thread:$0]  %s3584_s6, 128, %s48_s30, [#allocation5], %s2798_s16, %s2798_s16, %s2799_s17  }
   0xe   :  { %s2800_s20 = smov [#allocation2]   ;;  %s2801_s22 = smov [#allocation6]  }
   0xf   :  { %s34_s21 = sshll.u32 %s2800_s20, 4  ;;  %s61_s23 = sshll.u32 %s2801_s22, 4  ;;  %s35_s21 = int_to_ptr.vmem [resolvable:$true] %s34_s21  ;;  %s62_s23 = int_to_ptr.vmem [resolvable:$true] %s61_s23 }
  0x10   :  { %s2739_s24 = scalar_lea.vmem %s35_s21, 48  ;;  %s2743_s25 = scalar_lea.vmem %s35_s21, 64 }
  0x11   :  { %p2740_p5 = scmp.ne.s32.totalorder %s35_s21, %s2739_s24  ;;  %p2744_p6 = scmp.lt.s32.totalorder %s35_s21, %s35_s21 }
  0x12   :  { %p2745_p7 = scmp.lt.s32.totalorder %s2743_s25, %s2739_s24 }
  0x14   :  { %p2746_p8 = por %p2745_p7, %p2744_p6 }
  0x16   :  { %p2747_p9 = pnand %p2746_p8, %p2740_p5 }
  0x18   :  { %2750 = shalt.err (!%p2747_p9)
}
  0x19   :  { %37 = dma.hbm_to_vmem [thread:$0]  %s3581_s3, 48, %s35_s21, [#allocation3]  }
  0x1a   :  { %s2759_s28 = scalar_lea.vmem %s62_s23, 640  ;;  %p2764_p11 = scmp.lt.s32.totalorder %s62_s23, %s62_s23 }
  0x1b   :  { %p2760_p10 = scmp.ne.s32.totalorder %s62_s23, %s2759_s28  ;;  %p2765_p12 = scmp.lt.s32.totalorder %s2759_s28, %s2759_s28 }
  0x1d   :  { %p2766_p13 = por %p2765_p12, %p2764_p11 }
  0x1f   :  { %p2767_p0 = pnand %p2766_p13, %p2760_p10 }
  0x21   :  { %2770 = shalt.err (!%p2767_p0)
}
  0x22   :  { %s2802_s6 = smov 128   ;;  %s2803_s29 = smov 8  }
  0x23   :  { %67 = dma.hbm_to_vmem [thread:$0]  %s3586_s8, 640, %s62_s23, [#allocation5], %s2802_s6, %s2802_s6, %s2803_s29  }
  0x24   :  { %s2804_s16 = smov [#allocation7]  }
  0x25   :  { %s74_s17 = sshll.u32 %s2804_s16, 4  ;;  %s75_s17 = int_to_ptr.vmem [resolvable:$true] %s74_s17 }
  0x26   :  { %s2779_s18 = scalar_lea.vmem %s75_s17, 32  ;;  %p2784_p2 = scmp.lt.s32.totalorder %s75_s17, %s75_s17 }
  0x27   :  { %p2780_p1 = scmp.ne.s32.totalorder %s75_s17, %s2779_s18  ;;  %p2785_p3 = scmp.lt.s32.totalorder %s2779_s18, %s2779_s18 }
  0x29   :  { %p2786_p4 = por %p2785_p3, %p2784_p2 }
  0x2b   :  { %p2787_p5 = pnand %p2786_p4, %p2780_p1 }
  0x2d   :  { %2790 = shalt.err (!%p2787_p5)
}
  0x2e   :  { %77 = dma.hbm_to_vmem [thread:$0]  %s3587_s9, 32, %s75_s17, [#allocation8]  }
  0x2f   :  { %2791 = dma.done.wait [#allocation3], 48  }
  0x30   :  { %2792 = vsyncadd [#allocation3], 4294967248 }
  0x31   :  { %2793 = dma.done.wait [#allocation5], 768  }
  0x32   :  { %2794 = vsyncadd [#allocation5], 4294966528 }
  0x33   :  { %2795 = dma.done.wait [#allocation8], 32  }
  0x34   :  { %2796 = vsyncadd [#allocation8], 4294967264  ;;  %v2805_v0 = vmov 0   ;;  %v2513_v1 = vld [vmem:[%s3580_s2 + $0x1c] ss:$12 sps:$4 sm:$0xff]   ;;  %v2519_v5 = vld [vmem:[%s3578_s0] sm:$0xff]   ;;  %v117_v17 = vlaneseq }
  0x35   :  { %229 = vmatprep.mubr.bf16.mxu0 %v2805_v0  ;;  %v2515_v2 = vld [vmem:[%s3580_s2 + $0x18] ss:$12 sps:$4 sm:$0xff]   ;;  %209 = vmatprep.subr.bf16.mxu0 %v2513_v1  ;;  %v2518_v4 = vld [vmem:[%s3580_s2] ss:$12 sps:$4 sm:$0xff]   ;;  %vm184_vm0 = vcmask 261120   ;;  %v2524_v7 = vld [vmem:[%s3582_s4 + $0x30] sm:$0xff]  }
  0x36   :  { %v2516_v3 = vld [vmem:[%s3580_s2 + $0x4] ss:$12 sps:$4 sm:$0xff]   ;;  %210 = vmatpush1.bf16.msra.mxu0 %v2515_v2  ;;  %2392 = vmatprep.mubr.msk.bf16.mxu1 %vm184_vm0, %v2519_v5  ;;  %v2523_v6 = vld [vmem:[%s3582_s4 + $0x38] sm:$0xff]   ;;  %v2525_v8 = vld [vmem:[%s3582_s4 + $0x28] sm:$0xff]   ;;  %v2960_v18 = vshrl.u32 %v117_v17, 7  ;;  %vm484_vm1 = vcmask 130048  }
  0x37   :  { %211 = vmatprep.subr.bf16.mxu0 %v2516_v3  ;;  %v2925_v9 = vld [vmem:[%s3578_s0 + $0x8] sm:$0xff]   ;;  %v2933_v10 = vld [vmem:[%s3578_s0 + $0x10] sm:$0xff]   ;;  %v2941_v11 = vld [vmem:[%s3578_s0 + $0x18] sm:$0xff]   ;;  %vm984_vm2 = vcmask 1043456   ;;  %vm916_vm3 = vcmask 64512   ;;  %vm971_vm4 = vcmask 326656  }
  0x38   :  { %v2526_v12 = vld [vmem:[%s3582_s4 + $0x20] sm:$0xff]   ;;  %v2527_v13 = vld [vmem:[%s3582_s4 + $0x18] sm:$0xff]   ;;  %v2528_v14 = vld [vmem:[%s3582_s4 + $0x10] sm:$0xff]   ;;  %v2963_v19 = vsub.s32 1, %v2960_v18  ;;  %v2966_v20 = vsub.s32 0, %v2960_v18  ;;  %vm2081_vm5 = vcmask 7168  }
  0x39   :  { %v2529_v15 = vld [vmem:[%s3582_s4 + $0x8] sm:$0xff]   ;;  %v2530_v16 = vld [vmem:[%s3582_s4] sm:$0xff]  }
  0x3a   :  { %212 = vmatpush1.bf16.msra.mxu0 %v2518_v4  ;;  %v2968_v21 = vld [vmem:[#allocation2] sm:$0x7] }
  0x3b   :  { %2400 = vmatprep.subr.bf16.mxu0 %v2523_v6  ;;  %v124_v23 = vrot.slane %v2968_v21, %v2963_v19  ;;  %v120_v25 = vrot.slane %v2968_v21, %v2966_v20 }
  0x3d   :  { %2107 = vmatmul.mubr.msk.bf16.vlgmr.msra.gmra.mxu0 %vm184_vm0, %v2519_v5 }
  0x3e   :  { %239 = vmatprep.mubr.bf16.mxu0 %v2805_v0  ;;  %2401 = vmatpush3.bf16.msra.mxu0 %v2523_v6 }
  0x3f   :  { %2402 = vmatprep.subr.bf16.mxu0 %v2524_v7 }
  0x42   :  { %2403 = vmatpush3.bf16.msra.mxu0 %v2524_v7 }
  0x43   :  { %2404 = vmatprep.subr.bf16.mxu0 %v2525_v8 }
  0x45   :  { %2108 = vmatmul.mubr.msk.bf16.gmra.mxu0 %vm184_vm0, %v2925_v9 }
  0x46   :  { %249 = vmatprep.mubr.bf16.mxu0 %v2805_v0  ;;  %2405 = vmatpush3.bf16.msra.mxu0 %v2525_v8 }
  0x47   :  { %2406 = vmatprep.subr.bf16.mxu0 %v2526_v12 }
  0x4a   :  { %2407 = vmatpush3.bf16.msra.mxu0 %v2526_v12 }
  0x4b   :  { %2408 = vmatprep.subr.bf16.mxu0 %v2527_v13 }
  0x4d   :  { %2109 = vmatmul.mubr.msk.bf16.gmra.mxu0 %vm184_vm0, %v2933_v10 }
  0x4e   :  { %259 = vmatprep.mubr.bf16.mxu0 %v2805_v0  ;;  %2409 = vmatpush3.bf16.msra.mxu0 %v2527_v13 }
  0x4f   :  { %2410 = vmatprep.subr.bf16.mxu0 %v2528_v14 }
  0x52   :  { %2411 = vmatpush3.bf16.msra.mxu0 %v2528_v14 }
  0x53   :  { %2412 = vmatprep.subr.bf16.mxu0 %v2529_v15 }
  0x55   :  { %2110 = vmatmul.mubr.msk.bf16.gmra.mxu0 %vm184_vm0, %v2941_v11 }
  0x56   :  { %2413 = vmatpush3.bf16.msra.mxu0 %v2529_v15 }
  0x57   :  { %2414 = vmatprep.subr.bf16.mxu0 %v2530_v16 }
  0x5a   :  { %2415 = vmatpush3.bf16.msra.mxu0 %v2530_v16 }
  0xfd   :  { %v231_v22 = vpop.f32.mrf.mxu0 }
  0xfe   :  { %v232_v29 = vadd.f32 %v231_v22, %v120_v25 }
  0xff   :  { %v233_v24 = vpop.f32.mrf.mxu0 }
 0x100   :  { %v234_v27 = vadd.f32 %v233_v24, %v124_v23  ;;  %v2531_v24 = vld [vmem:[%s3580_s2 + $0x20] ss:$12 sps:$4 sm:$0xff]  }
 0x101   :  { %v235_v26 = vpop.f32.mrf.mxu0  ;;  %2388 = vmatprep.subr.bf16.mxu1 %v2531_v24 }
 0x102   :  { %v236_v30 = vadd.f32 %v235_v26, %v120_v25  ;;  %v335_v33 = vmul.f32 %v234_v27, %v232_v29  ;;  %2389 = vmatpush3.bf16.msra.mxu1 %v2531_v24  ;;  %v2532_v26 = vld [vmem:[%s3580_s2 + $0x8] ss:$12 sps:$4 sm:$0xff]  }
 0x103   :  { %v237_v28 = vpop.f32.mrf.mxu0  ;;  %2390 = vmatprep.subr.bf16.mxu1 %v2532_v26 }
 0x104   :  { %v238_v31 = vadd.f32 %v237_v28, %v124_v23 }
 0x105   :  { %v241_v32 = vpop.f32.mrf.mxu0 }
 0x106   :  { %v336_v34 = vmul.f32 %v238_v31, %v236_v30  ;;  %v242_v40 = vadd.f32 %v241_v32, %v120_v25  ;;  %2391 = vmatpush3.bf16.msra.mxu1 %v2532_v26 }
 0x107   :  { %v243_v35 = vpop.f32.mrf.mxu0 }
 0x108   :  { %v359_v36 = vpack.c.bf16 %v336_v34, %v335_v33  ;;  %v244_v38 = vadd.f32 %v243_v35, %v124_v23 }
 0x109   :  { %v245_v37 = vpop.f32.mrf.mxu0  ;;  %2393 = vmatmul.mubr.msk.bf16.vlgmr.msra.gmra.mxu1 %vm184_vm0, %v2925_v9  ;;  %v2533_v9 = vld [vmem:[%s3583_s5] sm:$0xff]  }
 0x10a   :  { %2416 = vmatprep.mubr.bf16.mxu0 %v359_v36  ;;  %v246_v41 = vadd.f32 %v245_v37, %v120_v25  ;;  %v337_v44 = vmul.f32 %v244_v38, %v242_v40  ;;  %2396 = vmatprep.mubr.msk.bf16.mxu1 %vm184_vm0, %v2933_v10 }
 0x10b   :  { %v247_v39 = vpop.f32.mrf.mxu0  ;;  %2424 = vmatprep.subr.bf16.mxu1 %v2533_v9 }
 0x10c   :  { %v248_v42 = vadd.f32 %v247_v39, %v124_v23  ;;  %2425 = vmatpush3.bf16.msra.mxu1 %v2533_v9 }
 0x10d   :  { %v251_v43 = vpop.f32.mrf.mxu0 }
 0x10e   :  { %v338_v45 = vmul.f32 %v248_v42, %v246_v41  ;;  %v252_v51 = vadd.f32 %v251_v43, %v120_v25 }
 0x10f   :  { %v253_v46 = vpop.f32.mrf.mxu0 }
 0x110   :  { %v360_v47 = vpack.c.bf16 %v338_v45, %v337_v44  ;;  %v254_v49 = vadd.f32 %v253_v46, %v124_v23 }
 0x111   :  { %v255_v48 = vpop.f32.mrf.mxu0  ;;  %2397 = vmatmul.mubr.msk.bf16.gmra.mxu1 %vm184_vm0, %v2941_v11 }
 0x112   :  { %2417 = vmatmul.mubr.bf16.vlgmr.msra.gmra.mxu0 %v360_v47  ;;  %v256_v52 = vadd.f32 %v255_v48, %v120_v25  ;;  %v339_v55 = vmul.f32 %v254_v49, %v252_v51 }
 0x113   :  { %v257_v50 = vpop.f32.mrf.mxu0 }
 0x114   :  { %v258_v53 = vadd.f32 %v257_v50, %v124_v23 }
 0x115   :  { %v261_v54 = vpop.f32.mrf.mxu0 }
 0x116   :  { %v340_v56 = vmul.f32 %v258_v53, %v256_v52  ;;  %v262_v62 = vadd.f32 %v261_v54, %v120_v25 }
 0x117   :  { %v263_v57 = vpop.f32.mrf.mxu0 }
 0x118   :  { %v361_v58 = vpack.c.bf16 %v340_v56, %v339_v55  ;;  %v264_v60 = vadd.f32 %v263_v57, %v124_v23 }
 0x119   :  { %v265_v59 = vpop.f32.mrf.mxu0 }
 0x11a   :  { %2420 = vmatprep.mubr.bf16.mxu0 %v361_v58  ;;  %v266_v63 = vadd.f32 %v265_v59, %v120_v25  ;;  %v341_v2 = vmul.f32 %v264_v60, %v262_v62 }
 0x11b   :  { %v267_v61 = vpop.f32.mrf.mxu0 }
 0x11c   :  { %v268_v1 = vadd.f32 %v267_v61, %v124_v23 }
 0x11e   :  { %v342_v3 = vmul.f32 %v268_v1, %v266_v63 }
 0x120   :  { %v362_v4 = vpack.c.bf16 %v342_v3, %v341_v2 }
 0x122   :  { %2421 = vmatmul.mubr.bf16.gmra.mxu0 %v362_v4 }
 0x1d2   :  { %v2418_v5 = vpop.f32.mrf.mxu0 }
 0x1d3   :  { %v478_v6 = vmul.f32 0.35355338, %v2418_v5 }
 0x1d4   :  { %v445_v7 = vpop.f32.mrf.mxu0 }
 0x1d5   :  { %v476_v8 = vmul.f32 0.35355338, %v445_v7  ;;  %v491_v12 = vsel %vm484_vm1, %v478_v6, -inf }
 0x1d6   :  { %492 = vmax.xlane.f32.xlu1 %v491_v12  ;;  %v2419_v13 = vpop.f32.mrf.mxu0  ;;  %v2534_v12 = vld [vmem:[#allocation4] sm:$0xff]  }
 0x1d7   :  { %v479_v14 = vmul.f32 0.35355338, %v2419_v13  ;;  %v485_v15 = vsel %vm484_vm1, %v476_v8, -inf  ;;  %2434 = vmatprep.subr.bf16.mxu1 %v2534_v12  ;;  %v2535_v13 = vld [vmem:[%s3585_s7 + $0x38] sm:$0xff]  }
 0x1d8   :  { %486 = vmax.xlane.f32.xlu0 %v485_v15  ;;  %v448_v16 = vpop.f32.mrf.mxu0  ;;  %2444 = vmatprep.subr.bf16.mxu0 %v2535_v13  ;;  %v2537_v15 = vld [vmem:[%s3585_s7 + $0x28] sm:$0xff]  }
 0x1d9   :  { %v477_v17 = vmul.f32 0.35355338, %v448_v16  ;;  %v494_v22 = vsel %vm484_vm1, %v479_v14, -inf  ;;  %2445 = vmatpush3.bf16.msra.mxu0 %v2535_v13  ;;  %v2538_v16 = vld [vmem:[%s3585_s7 + $0x20] sm:$0xff]  }
 0x1da   :  { %495 = vmax.xlane.f32.xlu1 %v494_v22  ;;  %v2394_v22 = vpop.f32.mrf.mxu1 }
 0x1db   :  { %v488_v23 = vsel %vm484_vm1, %v477_v17, -inf }
 0x1dc   :  { %489 = vmax.xlane.f32.xlu0 %v488_v23  ;;  %v3037_v23 = vpop.f32.mrf.mxu1 }
 0x1de   :  { %v2395_v24 = vpop.f32.mrf.mxu1 }
 0x1e2   :  { %v2422_v25 = vpop.f32.mrf.mxu0 }
 0x1e3   :  { %v482_v30 = vmul.f32 0.35355338, %v2422_v25  ;;  %v3039_v25 = vpop.f32.mrf.mxu1 }
 0x1e4   :  { %v461_v27 = vpop.f32.mrf.mxu0 }
 0x1e5   :  { %v480_v28 = vmul.f32 0.35355338, %v461_v27  ;;  %v503_v35 = vsel %vm484_vm1, %v482_v30, -inf  ;;  %v3041_v26 = vpop.f32.mrf.mxu1 }
 0x1e6   :  { %v2423_v29 = vpop.f32.mrf.mxu0 }
 0x1e7   :  { %v497_v31 = vsel %vm484_vm1, %v480_v28, -inf  ;;  %v483_v34 = vmul.f32 0.35355338, %v2423_v29  ;;  %v3043_v27 = vpop.f32.mrf.mxu1 }
 0x1e8   :  { %498 = vmax.xlane.f32.xlu0 %v497_v31  ;;  %v464_v32 = vpop.f32.mrf.mxu0 }
 0x1e9   :  { %v481_v33 = vmul.f32 0.35355338, %v464_v32  ;;  %v506_v37 = vsel %vm484_vm1, %v483_v34, -inf }
 0x1eb   :  { %v500_v36 = vsel %vm484_vm1, %v481_v33, -inf }
 0x1ec   :  { %504 = vmax.xlane.f32.xlu0 %v503_v35  ;;  %501 = vmax.xlane.f32.xlu1 %v500_v36 }
 0x1f0   :  { %507 = vmax.xlane.f32.xlu1 %v506_v37 }
 0x25f   :  { %v493_v10 = vpop.xlane.xlu1 %492 }
 0x260   :  { %v511_v40 = vsub.f32 %v478_v6, %v493_v10 }
 0x261   :  { %v487_v38 = vpop.xlane.xlu0 %486 }
 0x262   :  { %v509_v39 = vsub.f32 %v476_v8, %v487_v38  ;;  %v521_v47 = vmul.f32 1.442695, %v511_v40 }
 0x263   :  { %v496_v41 = vpop.xlane.xlu1 %495 }
 0x264   :  { %v517_v42 = vmul.f32 1.442695, %v509_v39  ;;  %v512_v43 = vsub.f32 %v479_v14, %v496_v41  ;;  %v2536_v14 = vld [vmem:[%s3585_s7 + $0x30] sm:$0xff]  }
 0x265   :  { %v490_v44 = vpop.xlane.xlu0 %489  ;;  %2446 = vmatprep.subr.bf16.mxu0 %v2536_v14 }
 0x266   :  { %v523_v45 = vmul.f32 1.442695, %v512_v43  ;;  %v510_v46 = vsub.f32 %v477_v17, %v490_v44  ;;  %2679 = vpow2.f32 %v517_v42  ;;  %2447 = vmatpush3.bf16.msra.mxu0 %v2536_v14  ;;  %v2539_v17 = vld [vmem:[%s3585_s7 + $0x18] sm:$0xff]  }
 0x267   :  { %2448 = vmatprep.subr.bf16.mxu0 %v2537_v15 }
 0x268   :  { %v519_v48 = vmul.f32 1.442695, %v510_v46  ;;  %2681 = vpow2.f32 %v523_v45 }
 0x26a   :  { %2683 = vpow2.f32 %v519_v48  ;;  %2449 = vmatpush3.bf16.msra.mxu0 %v2537_v15 }
 0x26b   :  { %2685 = vpow2.f32 %v521_v47  ;;  %2450 = vmatprep.subr.bf16.mxu0 %v2538_v16 }
 0x26e   :  { %2451 = vmatpush3.bf16.msra.mxu0 %v2538_v16 }
 0x26f   :  { %2452 = vmatprep.subr.bf16.mxu0 %v2539_v17 }
 0x271   :  { %v499_v11 = vpop.xlane.xlu0 %498 }
 0x272   :  { %v513_v49 = vsub.f32 %v480_v28, %v499_v11  ;;  %2453 = vmatpush3.bf16.msra.mxu0 %v2539_v17  ;;  %v3045_v28 = vpop.f32.mrf.mxu1 }
 0x273   :  { %v2997_v50 = vpop.eup %2679 }
 0x274   :  { %v525_v54 = vmul.f32 1.442695, %v513_v49  ;;  %v3047_v29 = vpop.f32.mrf.mxu1 }
 0x275   :  { %v505_v51 = vpop.xlane.xlu0 %504  ;;  %v502_v52 = vpop.xlane.xlu1 %501 }
 0x276   :  { %v2999_v53 = vpop.eup %2681  ;;  %v515_v55 = vsub.f32 %v482_v30, %v505_v51  ;;  %v514_v56 = vsub.f32 %v481_v33, %v502_v52  ;;  %2687 = vpow2.f32 %v525_v54 }
 0x277   :  { %v3001_v57 = vpop.eup %2683 }
 0x278   :  { %v3003_v58 = vpop.eup %2685  ;;  %v527_v59 = vmul.f32 1.442695, %v514_v56  ;;  %v535_v60 = vpack.c.bf16 %v3001_v57, %v2997_v50  ;;  %v529_v62 = vmul.f32 1.442695, %v515_v55  ;;  %v2540_v55 = vld [vmem:[%s3585_s7 + $0x10] sm:$0xff]   ;;  %v2541_v56 = vld [vmem:[%s3585_s7 + $0x8] sm:$0xff]  }
 0x279   :  { %v536_v61 = vpack.c.bf16 %v2999_v53, %v3003_v58  ;;  %v508_v63 = vpop.xlane.xlu1 %507  ;;  %2454 = vmatprep.subr.bf16.mxu0 %v2540_v55 }
 0x27a   :  { %v516_v1 = vsub.f32 %v483_v34, %v508_v63  ;;  %2426 = vmatprep.mubr.msk.bf16.mxu1 %vm484_vm1, %v535_v60  ;;  %2689 = vpow2.f32 %v527_v59  ;;  %2455 = vmatpush3.bf16.msra.mxu0 %v2540_v55  ;;  %v2574_v55 = vld [vmem:[%s3588_s10 + $0x8c] ss:$16 sps:$4 sm:$0xff]  }
 0x27b   :  { %2427 = vmatmul.mubr.msk.bf16.vlgmr.msra.gmra.mxu1 %vm484_vm1, %v536_v61  ;;  %2691 = vpow2.f32 %v529_v62  ;;  %2456 = vmatprep.subr.bf16.mxu0 %v2541_v56 }
 0x27c   :  { %v531_v2 = vmul.f32 1.442695, %v516_v1  ;;  %2435 = vmatpush3.bf16.msra.mxu1 %v2534_v12 }
 0x27e   :  { %2693 = vpow2.f32 %v531_v2  ;;  %2457 = vmatpush3.bf16.msra.mxu0 %v2541_v56  ;;  %v2572_v56 = vld [vmem:[%s3588_s10 + $0x88] ss:$16 sps:$4 sm:$0xff]  }
 0x283   :  { %v3011_v3 = vpop.eup %2687 }
 0x287   :  { %v3013_v4 = vpop.eup %2689 }
 0x288   :  { %v537_v5 = vpack.c.bf16 %v3013_v4, %v3011_v3  ;;  %v3017_v6 = vpop.eup %2691 }
 0x28a   :  { %2430 = vmatprep.mubr.msk.bf16.mxu1 %vm484_vm1, %v537_v5 }
 0x28b   :  { %v2694_v7 = vpop.eup %2693 }
 0x28c   :  { %v538_v8 = vpack.c.bf16 %v2694_v7, %v3017_v6 }
 0x28e   :  { %2431 = vmatmul.mubr.msk.bf16.gmra.mxu1 %vm484_vm1, %v538_v8 }
 0x33b   :  { %v2428_v30 = vpop.f32.mrf.mxu1 }
 0x33d   :  { %v591_v31 = vpop.f32.mrf.mxu1 }
 0x33e   :  { %2695 = vrcp.f32 %v591_v31 }
 0x33f   :  { %v2429_v32 = vpop.f32.mrf.mxu1 }
 0x340   :  { %2697 = vrcp.f32 %v2429_v32 }
 0x341   :  { %2699 = vrcp.f32 %v2428_v30  ;;  %v594_v33 = vpop.f32.mrf.mxu1 }
 0x342   :  { %2701 = vrcp.f32 %v594_v33 }
 0x34b   :  { %v2696_v34 = vpop.eup %2695 }
 0x34c   :  { %v630_v39 = vmul.f32 %v2696_v34, %v2997_v50 }
 0x34d   :  { %v2698_v35 = vpop.eup %2697 }
 0x34e   :  { %v2700_v36 = vpop.eup %2699  ;;  %v2432_v37 = vpop.f32.mrf.mxu1  ;;  %v633_v10 = vmul.f32 %v2698_v35, %v2999_v53  ;;  %v929_v35 = vld [vmem:[#allocation6 + $0x20] sm:$0xff] }
 0x34f   :  { %v2702_v9 = vpop.eup %2701  ;;  %v632_v41 = vmul.f32 %v2700_v36, %v3003_v58  ;;  %v127_v58 = vsub.s32 2, %v2960_v18  ;;  %v2146_v36 = vcombine.high %v929_v35, %v929_v35 }
 0x350   :  { %v607_v38 = vpop.f32.mrf.mxu1  ;;  %v631_v40 = vmul.f32 %v2702_v9, %v3001_v57  ;;  %v2542_v57 = vld [vmem:[%s3585_s7] sm:$0xff]   ;;  %v2548_v9 = vld [vmem:[#allocation6] ss:$8 sps:$4 sm:$0xff]  }
 0x351   :  { %2703 = vrcp.f32 %v607_v38  ;;  %v641_v44 = vpack.c.bf16 %v633_v10, %v632_v41  ;;  %2458 = vmatprep.subr.bf16.mxu0 %v2542_v57  ;;  %v128_v59 = vrot.slane %v2968_v21, %v127_v58  ;;  %2147 = vmatprep.subr.msk.bf16.mxu1 %vm984_vm2, %v2146_v36 }
 0x352   :  { %v2433_v42 = vpop.f32.mrf.mxu1  ;;  %v640_v43 = vpack.c.bf16 %v631_v40, %v630_v39  ;;  %2459 = vmatpush3.bf16.msra.mxu0 %v2542_v57  ;;  %v2580_v57 = vld [vmem:[%s3588_s10 + $0x6c] ss:$16 sps:$4 sm:$0xff]  }
 0x353   :  { %2705 = vrcp.f32 %v2433_v42  ;;  %v313_v62 = vadd.f32 %v2394_v22, %v128_v59  ;;  %v316_v63 = vadd.f32 %v2395_v24, %v128_v59  ;;  %v305_v2 = vadd.f32 %v3037_v23, %v128_v59 }
 0x354   :  { %2707 = vrcp.f32 %v2432_v37  ;;  %v610_v45 = vpop.f32.mrf.mxu1  ;;  %2436 = vmatprep.mubr.msk.bf16.mxu1 %vm484_vm1, %v640_v43  ;;  %v329_v15 = vadd.f32 %v3041_v26, %v128_v59  ;;  %v332_v16 = vadd.f32 %v3045_v28, %v128_v59  ;;  %v321_v22 = vadd.f32 %v3043_v27, %v128_v59  ;;  %v2547_v37 = vld [vmem:[#allocation6 + $0x14] ss:$8 sps:$4 sm:$0xff]   ;;  %v2545_v27 = vld [vmem:[#allocation6 + $0x10] ss:$8 sps:$4 sm:$0xff]  }
 0x355   :  { %2709 = vrcp.f32 %v610_v45  ;;  %2437 = vmatmul.mubr.msk.bf16.vlgmr.msra.gmra.mxu1 %vm484_vm1, %v641_v44  ;;  %v324_v23 = vadd.f32 %v3047_v29, %v128_v59  ;;  %v2145_v26 = vcombine.low %v929_v35, %v929_v35  ;;  %v2550_v29 = vld [vmem:[#allocation6 + $0x4] ss:$8 sps:$4 sm:$0xff]   ;;  %v2559_v35 = vld [vmem:[%s3588_s10 + $0xc4] ss:$16 sps:$4 sm:$0xff]  }
 0x357   :  { %v986_v28 = vsel %vm984_vm2, %v2145_v26, 0 }
 0x358   :  { %1002 = vmatpush1.bf16.msra.mxu1 %v986_v28 }
 0x359   :  { %1003 = vmatprep.subr.bf16.mxu1 %v2547_v37 }
 0x35c   :  { %1004 = vmatpush1.bf16.msra.mxu1 %v2545_v27  ;;  %v2557_v27 = vld [vmem:[%s3588_s10 + $0xc0] ss:$16 sps:$4 sm:$0xff]  }
 0x35d   :  { %1005 = vmatprep.subr.bf16.mxu1 %v2550_v29  ;;  %v2565_v29 = vld [vmem:[%s3588_s10 + $0xa4] ss:$16 sps:$4 sm:$0xff]  }
 0x35e   :  { %v2704_v46 = vpop.eup %2703 }
 0x35f   :  { %v634_v50 = vmul.f32 %v2704_v46, %v3011_v3  ;;  %v308_v3 = vadd.f32 %v3039_v25, %v128_v59  ;;  %v2578_v59 = vld [vmem:[%s3588_s10 + $0x68] ss:$16 sps:$4 sm:$0xff]  }
 0x360   :  { %v2706_v47 = vpop.eup %2705  ;;  %1006 = vmatpush1.bf16.msra.mxu1 %v2548_v9 }
 0x361   :  { %v2708_v48 = vpop.eup %2707  ;;  %v637_v49 = vmul.f32 %v2706_v47, %v2694_v7 }
 0x362   :  { %v2710_v11 = vpop.eup %2709  ;;  %v636_v52 = vmul.f32 %v2708_v48, %v3017_v6  ;;  %v2553_v48 = vld [vmem:[%s3588_s10 + $0xe4] ss:$16 sps:$4 sm:$0xff]  }
 0x363   :  { %v635_v51 = vmul.f32 %v2710_v11, %v3013_v4  ;;  %v2554_v11 = vld [vmem:[%s3588_s10 + $0xe8] ss:$16 sps:$4 sm:$0xff]   ;;  %1494 = vmatprep.subr.bf16.mxu1 %v2553_v48 }
 0x364   :  { %v643_v54 = vpack.c.bf16 %v637_v49, %v636_v52  ;;  %v2556_v49 = vld [vmem:[%s3588_s10 + $0xec] ss:$16 sps:$4 sm:$0xff]   ;;  %v2560_v52 = vld [vmem:[%s3588_s10 + $0xc8] ss:$16 sps:$4 sm:$0xff]  }
 0x365   :  { %v642_v53 = vpack.c.bf16 %v635_v51, %v634_v50  ;;  %v2562_v51 = vld [vmem:[%s3588_s10 + $0xcc] ss:$16 sps:$4 sm:$0xff]   ;;  %1567 = vmatprep.subr.bf16.mxu0 %v2556_v49  ;;  %v2583_v49 = vld [vmem:[%s3588_s10 + $0x44] ss:$16 sps:$4 sm:$0xff]  }
 0x367   :  { %2440 = vmatprep.mubr.msk.bf16.mxu1 %vm484_vm1, %v642_v53  ;;  %v2568_v53 = vld [vmem:[%s3588_s10 + $0xac] ss:$16 sps:$4 sm:$0xff]  }
 0x368   :  { %2441 = vmatmul.mubr.msk.bf16.gmra.mxu1 %vm484_vm1, %v643_v54  ;;  %v2566_v54 = vld [vmem:[%s3588_s10 + $0xa8] ss:$16 sps:$4 sm:$0xff]  }
 0x369   :  { %1023 = vmatprep.mubr.bf16.mxu1 %v2805_v0 }
 0x415   :  { %v2438_v60 = vpop.f32.mrf.mxu1 }
 0x416   :  { %v729_v4 = vmul.f32 %v2438_v60, %v313_v62  ;;  %v2586_v60 = vld [vmem:[%s3588_s10 + $0x4c] ss:$16 sps:$4 sm:$0xff]  }
 0x417   :  { %v696_v61 = vpop.f32.mrf.mxu1  ;;  %v2592_v62 = vld [vmem:[%s3588_s10 + $0x2c] ss:$16 sps:$4 sm:$0xff]  }
 0x418   :  { %v727_v7 = vmul.f32 %v696_v61, %v305_v2  ;;  %v2584_v61 = vld [vmem:[%s3588_s10 + $0x48] ss:$16 sps:$4 sm:$0xff]  }
 0x419   :  { %v2439_v1 = vpop.f32.mrf.mxu1  ;;  %v2596_v2 = vld [vmem:[%s3588_s10 + $0x8] ss:$16 sps:$4 sm:$0xff]  }
 0x41a   :  { %v730_v5 = vmul.f32 %v2439_v1, %v316_v63  ;;  %v2590_v63 = vld [vmem:[%s3588_s10 + $0x28] ss:$16 sps:$4 sm:$0xff]   ;;  %v2598_v1 = vld [vmem:[%s3588_s10 + $0xc] ss:$16 sps:$4 sm:$0xff]  }
 0x41b   :  { %v699_v6 = vpop.f32.mrf.mxu1 }
 0x41c   :  { %v752_v8 = vpack.c.bf16 %v730_v5, %v729_v4  ;;  %v728_v12 = vmul.f32 %v699_v6, %v308_v3  ;;  %v2604_v3 = vld [vmem:[%s3588_s10 + $0x1ec] ss:$16 sps:$4 sm:$0xff]   ;;  %v2602_v4 = vld [vmem:[%s3588_s10 + $0x1e8] ss:$16 sps:$4 sm:$0xff]  }
 0x41d   :  { %v2610_v5 = vld [vmem:[%s3588_s10 + $0x1cc] ss:$16 sps:$4 sm:$0xff]   ;;  %v2608_v6 = vld [vmem:[%s3588_s10 + $0x1c8] ss:$16 sps:$4 sm:$0xff]  }
 0x41e   :  { %v751_v13 = vpack.c.bf16 %v728_v12, %v727_v7  ;;  %v2616_v7 = vld [vmem:[%s3588_s10 + $0x1ac] ss:$16 sps:$4 sm:$0xff]  }
 0x41f   :  { %v2622_v12 = vld [vmem:[%s3588_s10 + $0x18c] ss:$16 sps:$4 sm:$0xff]  }
 0x420   :  { %2460 = vmatprep.mubr.bf16.mxu0 %v751_v13  ;;  %v2620_v13 = vld [vmem:[%s3588_s10 + $0x188] ss:$16 sps:$4 sm:$0xff]  }
 0x421   :  { %2461 = vmatmul.mubr.bf16.vlgmr.msra.gmra.mxu0 %v752_v8  ;;  %v2614_v8 = vld [vmem:[%s3588_s10 + $0x1a8] ss:$16 sps:$4 sm:$0xff]  }
 0x422   :  { %1568 = vmatpush1.bf16.msra.mxu0 %v2554_v11 }
 0x423   :  { %1569 = vmatprep.subr.bf16.mxu0 %v2562_v51 }
 0x426   :  { %1570 = vmatpush1.bf16.msra.mxu0 %v2560_v52 }
 0x427   :  { %1571 = vmatprep.subr.bf16.mxu0 %v2568_v53 }
 0x428   :  { %v2442_v14 = vpop.f32.mrf.mxu1 }
 0x429   :  { %v733_v24 = vmul.f32 %v2442_v14, %v329_v15  ;;  %v2628_v14 = vld [vmem:[%s3588_s10 + $0x16c] ss:$16 sps:$4 sm:$0xff]   ;;  %v2250_v15 = vld [vmem:[%s3579_s1] sm:$0xff]  }
 0x42a   :  { %v712_v21 = vpop.f32.mrf.mxu1  ;;  %1572 = vmatpush1.bf16.msra.mxu0 %v2566_v54 }
 0x42b   :  { %v731_v31 = vmul.f32 %v712_v21, %v321_v22  ;;  %1573 = vmatprep.subr.bf16.mxu0 %v2574_v55  ;;  %v2626_v21 = vld [vmem:[%s3588_s10 + $0x168] ss:$16 sps:$4 sm:$0xff]   ;;  %v2581_v55 = vld [vmem:[%s3588_s10 + $0x40] ss:$16 sps:$4 sm:$0xff]  }
 0x42c   :  { %v2443_v17 = vpop.f32.mrf.mxu1 }
 0x42d   :  { %v734_v25 = vmul.f32 %v2443_v17, %v332_v16  ;;  %v2251_v16 = vunpack.c.l.bf16 %v2250_v15  ;;  %v2252_v17 = vunpack.c.h.bf16 %v2250_v15  ;;  %v2623_v15 = vld [vmem:[%s3588_s10 + $0x160] ss:$16 sps:$4 sm:$0xff]  }
 0x42e   :  { %v715_v30 = vpop.f32.mrf.mxu1  ;;  %1574 = vmatpush1.bf16.msra.mxu0 %v2572_v56 }
 0x42f   :  { %v754_v32 = vpack.c.bf16 %v734_v25, %v733_v24  ;;  %v732_v33 = vmul.f32 %v715_v30, %v324_v23  ;;  %1575 = vmatprep.subr.bf16.mxu0 %v2580_v57  ;;  %v2265_v25 = vld [vmem:[%s3579_s1 + $0x8] sm:$0xff]  }
 0x430   :  { %v2255_v36 = vunpack.c.l.bf16 %v2265_v25  ;;  %v2256_v26 = vunpack.c.h.bf16 %v2265_v25  ;;  %v2640_v25 = vld [vmem:[%s3588_s10 + $0x12c] ss:$16 sps:$4 sm:$0xff]  }
 0x431   :  { %v753_v34 = vpack.c.bf16 %v732_v33, %v731_v31  ;;  %v2551_v33 = vld [vmem:[%s3588_s10 + $0xe0] ss:$16 sps:$4 sm:$0xff]  }
 0x432   :  { %1576 = vmatpush1.bf16.msra.mxu0 %v2578_v59 }
 0x433   :  { %2464 = vmatprep.mubr.bf16.mxu0 %v753_v34  ;;  %1577 = vmatprep.subr.bf16.mxu0 %v2586_v60 }
 0x434   :  { %2465 = vmatmul.mubr.bf16.gmra.mxu0 %v754_v32 }
 0x436   :  { %1578 = vmatpush1.bf16.msra.mxu0 %v2584_v61  ;;  %v2589_v61 = vld [vmem:[%s3588_s10 + $0x24] ss:$16 sps:$4 sm:$0xff]  }
 0x437   :  { %1579 = vmatprep.subr.bf16.mxu0 %v2592_v62  ;;  %v2587_v62 = vld [vmem:[%s3588_s10 + $0x20] ss:$16 sps:$4 sm:$0xff]  }
 0x43a   :  { %1580 = vmatpush1.bf16.msra.mxu0 %v2590_v63 }
 0x43b   :  { %1581 = vmatprep.subr.bf16.mxu0 %v2598_v1 }
 0x43e   :  { %1582 = vmatpush1.bf16.msra.mxu0 %v2596_v2  ;;  %v2595_v2 = vld [vmem:[%s3588_s10 + $0x4] ss:$16 sps:$4 sm:$0xff]  }
 0x43f   :  { %1583 = vmatprep.subr.bf16.mxu0 %v2604_v3 }
 0x442   :  { %1584 = vmatpush2.bf16.msra.mxu0 %v2602_v4  ;;  %v2601_v4 = vld [vmem:[%s3588_s10 + $0x1e4] ss:$16 sps:$4 sm:$0xff]  }
 0x443   :  { %1585 = vmatprep.subr.bf16.mxu0 %v2610_v5  ;;  %v2599_v5 = vld [vmem:[%s3588_s10 + $0x1e0] ss:$16 sps:$4 sm:$0xff]  }
 0x446   :  { %1586 = vmatpush2.bf16.msra.mxu0 %v2608_v6  ;;  %v2607_v6 = vld [vmem:[%s3588_s10 + $0x1c4] ss:$16 sps:$4 sm:$0xff]  }
 0x447   :  { %1587 = vmatprep.subr.bf16.mxu0 %v2616_v7  ;;  %v2605_v7 = vld [vmem:[%s3588_s10 + $0x1c0] ss:$16 sps:$4 sm:$0xff]  }
 0x44a   :  { %1588 = vmatpush2.bf16.msra.mxu0 %v2614_v8  ;;  %v2613_v8 = vld [vmem:[%s3588_s10 + $0x1a4] ss:$16 sps:$4 sm:$0xff]  }
 0x44b   :  { %1589 = vmatprep.subr.bf16.mxu0 %v2622_v12  ;;  %v2611_v12 = vld [vmem:[%s3588_s10 + $0x1a0] ss:$16 sps:$4 sm:$0xff]  }
 0x44e   :  { %1590 = vmatpush2.bf16.msra.mxu0 %v2620_v13  ;;  %v2619_v13 = vld [vmem:[%s3588_s10 + $0x184] ss:$16 sps:$4 sm:$0xff]  }
 0x44f   :  { %1591 = vmatprep.subr.bf16.mxu0 %v2628_v14  ;;  %v2617_v14 = vld [vmem:[%s3588_s10 + $0x180] ss:$16 sps:$4 sm:$0xff]  }
 0x452   :  { %1592 = vmatpush2.bf16.msra.mxu0 %v2626_v21  ;;  %v2625_v21 = vld [vmem:[%s3588_s10 + $0x164] ss:$16 sps:$4 sm:$0xff]  }
 0x4e1   :  { %v2462_v10 = vpop.f32.mrf.mxu0 }
 0x4e3   :  { %v837_v38 = vpop.f32.mrf.mxu0 }
 0x4e5   :  { %v2463_v39 = vpop.f32.mrf.mxu0 }
 0x4e6   :  { %v2498_v40 = vpack.i.bf16 %v2463_v39, %v2462_v10 }
 0x4e7   :  { %v840_v41 = vpop.f32.mrf.mxu0 }
 0x4e8   :  { %v2493_v42 = vpack.i.bf16 %v840_v41, %v837_v38  ;;  %2499 = vrot.lane.b32.xlu1 %v2498_v40, %s2803_s29  ;;  %v2563_v38 = vld [vmem:[%s3588_s10 + $0xa0] ss:$16 sps:$4 sm:$0xff]   ;;  %v2571_v40 = vld [vmem:[%s3588_s10 + $0x84] ss:$16 sps:$4 sm:$0xff]  }
 0x4e9   :  { %v2266_v41 = vld [vmem:[%s3579_s1 + $0x10] sm:$0xff]  }
 0x4ea   :  { %2494 = vrot.lane.b32.xlu0 %v2493_v42, %s2803_s29  ;;  %v2569_v42 = vld [vmem:[%s3588_s10 + $0x80] ss:$16 sps:$4 sm:$0xff]  }
 0x4f4   :  { %v2466_v43 = vpop.f32.mrf.mxu0 }
 0x4f6   :  { %v853_v44 = vpop.f32.mrf.mxu0 }
 0x4f8   :  { %v2467_v45 = vpop.f32.mrf.mxu0 }
 0x4f9   :  { %v2508_v50 = vpack.i.bf16 %v2467_v45, %v2466_v43  ;;  %v2577_v43 = vld [vmem:[%s3588_s10 + $0x64] ss:$16 sps:$4 sm:$0xff]   ;;  %v2260_v45 = vunpack.c.h.bf16 %v2266_v41 }
 0x4fa   :  { %v856_v46 = vpop.f32.mrf.mxu0 }
 0x4fb   :  { %v2503_v47 = vpack.i.bf16 %v856_v46, %v853_v44  ;;  %v2259_v44 = vunpack.c.l.bf16 %v2266_v41 }
 0x4fd   :  { %2504 = vrot.lane.b32.xlu1 %v2503_v47, %s2803_s29  ;;  %v2575_v47 = vld [vmem:[%s3588_s10 + $0x60] ss:$16 sps:$4 sm:$0xff]  }
 0x501   :  { %2509 = vrot.lane.b32.xlu1 %v2508_v50, %s2803_s29  ;;  %v2267_v50 = vld [vmem:[%s3579_s1 + $0x18] sm:$0xff]  }
 0x502   :  { %v2263_v56 = vunpack.c.l.bf16 %v2267_v50  ;;  %v2264_v57 = vunpack.c.h.bf16 %v2267_v50  ;;  %v3328_v50 = vld [vmem:[%s3590_s12 + $0xb8] sm:$0xff]  }
 0x55a   :  { %v2500_v30 = vpop.permute.xlu1 %2499 }
 0x55b   :  { %v2502_v37 = vunpack.i.h.bf16 %v2500_v30  ;;  %v2501_v28 = vunpack.i.l.bf16 %v2500_v30  ;;  %v2635_v30 = vld [vmem:[%s3588_s10 + $0x120] ss:$16 sps:$4 sm:$0xff]  }
 0x55c   :  { %v2495_v22 = vpop.permute.xlu0 %2494 }
 0x55d   :  { %v2497_v23 = vunpack.i.h.bf16 %v2495_v22  ;;  %v2496_v24 = vunpack.i.l.bf16 %v2495_v22  ;;  %v920_v9 = vsel %vm916_vm3, %v2256_v26, %v2502_v37  ;;  %v919_v10 = vsel %vm916_vm3, %v2255_v36, %v2501_v28  ;;  %v2629_v22 = vld [vmem:[%s3588_s10 + $0x140] ss:$16 sps:$4 sm:$0xff]   ;;  %v2647_v36 = vld [vmem:[%s3590_s12 + $0x78] sm:$0xff]   ;;  %v934_v37 = vld [vmem:[#allocation7] sm:$0x3] }
 0x55e   :  { %v931_v39 = vpack.c.bf16 %v920_v9, %v919_v10  ;;  %v3309_v26 = vld [vmem:[%s3590_s12 + $0xf8] sm:$0xff]  }
 0x55f   :  { %v918_v31 = vsel %vm916_vm3, %v2252_v17, %v2497_v23  ;;  %v917_v32 = vsel %vm916_vm3, %v2251_v16, %v2496_v24  ;;  %v2631_v16 = vld [vmem:[%s3588_s10 + $0x144] ss:$16 sps:$4 sm:$0xff]   ;;  %v2634_v17 = vld [vmem:[%s3588_s10 + $0x14c] ss:$16 sps:$4 sm:$0xff]   ;;  %v2632_v23 = vld [vmem:[%s3588_s10 + $0x148] ss:$16 sps:$4 sm:$0xff]  }
 0x560   :  { %v930_v34 = vpack.c.bf16 %v918_v31, %v917_v32  ;;  %1593 = vmatprep.subr.bf16.mxu0 %v2634_v17  ;;  %v2637_v24 = vld [vmem:[%s3588_s10 + $0x124] ss:$16 sps:$4 sm:$0xff]   ;;  %v2638_v31 = vld [vmem:[%s3588_s10 + $0x128] ss:$16 sps:$4 sm:$0xff]  }
 0x561   :  { %1594 = vmatpush2.bf16.msra.mxu0 %v2632_v23  ;;  %v2643_v32 = vld [vmem:[%s3588_s10 + $0x104] ss:$16 sps:$4 sm:$0xff]  }
 0x562   :  { %2148 = vmatmul.mubr.msk.bf16.vlgmr.msra.gmra.mxu1 %vm971_vm4, %v930_v34  ;;  %1595 = vmatprep.subr.bf16.mxu0 %v2640_v25  ;;  %v2641_v34 = vld [vmem:[%s3588_s10 + $0x100] ss:$16 sps:$4 sm:$0xff]   ;;  %v3396_v25 = vld [vmem:[%s3590_s12 + $0xd8] sm:$0xff]  }
 0x563   :  { %1033 = vmatprep.mubr.bf16.mxu1 %v2805_v0  ;;  %1495 = vmatpush1.bf16.msra.mxu1 %v2551_v33  ;;  %v2646_v33 = vld [vmem:[%s3588_s10 + $0x10c] ss:$16 sps:$4 sm:$0xff]   ;;  %v3385_v17 = vld [vmem:[%s3590_s12 + $0xa0] sm:$0xff]  }
 0x564   :  { %1496 = vmatprep.subr.bf16.mxu1 %v2559_v35  ;;  %v2644_v35 = vld [vmem:[%s3588_s10 + $0x108] ss:$16 sps:$4 sm:$0xff]  }
 0x565   :  { %1596 = vmatpush2.bf16.msra.mxu0 %v2638_v31 }
 0x566   :  { %1597 = vmatprep.subr.bf16.mxu0 %v2646_v33 }
 0x567   :  { %1497 = vmatpush1.bf16.msra.mxu1 %v2557_v27  ;;  %v3313_v27 = vrot.slane %v934_v37, %v2963_v19 }
 0x568   :  { %1498 = vmatprep.subr.bf16.mxu1 %v2565_v29  ;;  %v3316_v29 = vrot.slane %v934_v37, %v2966_v20 }
 0x569   :  { %1598 = vmatpush2.bf16.msra.mxu0 %v2644_v35  ;;  %v2665_v35 = vld [vmem:[%s3590_s12 + $0x18] sm:$0xff]  }
 0x56a   :  { %2149 = vmatmul.mubr.msk.bf16.gmra.mxu1 %vm971_vm4, %v931_v39  ;;  %2348 = vmatprep.subr.bf16.mxu0 %v3309_v26 }
 0x56b   :  { %1043 = vmatprep.mubr.bf16.mxu1 %v2805_v0  ;;  %1499 = vmatpush1.bf16.msra.mxu1 %v2563_v38 }
 0x56c   :  { %1500 = vmatprep.subr.bf16.mxu1 %v2571_v40 }
 0x56f   :  { %v2505_v46 = vpop.permute.xlu1 %2504  ;;  %1501 = vmatpush1.bf16.msra.mxu1 %v2569_v42 }
 0x570   :  { %v2507_v48 = vunpack.i.h.bf16 %v2505_v46  ;;  %v2506_v11 = vunpack.i.l.bf16 %v2505_v46  ;;  %1502 = vmatprep.subr.bf16.mxu1 %v2577_v43 }
 0x572   :  { %v922_v51 = vsel %vm916_vm3, %v2260_v45, %v2507_v48  ;;  %v921_v52 = vsel %vm916_vm3, %v2259_v44, %v2506_v11 }
 0x573   :  { %v932_v53 = vpack.c.bf16 %v922_v51, %v921_v52  ;;  %v2510_v54 = vpop.permute.xlu1 %2509  ;;  %1503 = vmatpush1.bf16.msra.mxu1 %v2575_v47 }
 0x574   :  { %v2512_v59 = vunpack.i.h.bf16 %v2510_v54  ;;  %v2511_v60 = vunpack.i.l.bf16 %v2510_v54  ;;  %1504 = vmatprep.subr.bf16.mxu1 %v2583_v49  ;;  %v2649_v49 = vld [vmem:[%s3590_s12 + $0x38] sm:$0xff]   ;;  %v3336_v54 = vld [vmem:[%s3590_s12 + $0xf0] sm:$0xff]  }
 0x575   :  { %2150 = vmatmul.mubr.msk.bf16.gmra.mxu1 %vm971_vm4, %v932_v53  ;;  %v2651_v53 = vld [vmem:[%s3590_s12 + $0x70] sm:$0xff]  }
 0x576   :  { %1053 = vmatprep.mubr.bf16.mxu1 %v2805_v0  ;;  %v924_v63 = vsel %vm916_vm3, %v2264_v57, %v2512_v59  ;;  %v923_v1 = vsel %vm916_vm3, %v2263_v56, %v2511_v60  ;;  %v2593_v0 = vld [vmem:[%s3588_s10] ss:$16 sps:$4 sm:$0xff]  }
 0x577   :  { %1505 = vmatpush1.bf16.msra.mxu1 %v2581_v55  ;;  %v933_v3 = vpack.c.bf16 %v924_v63, %v923_v1  ;;  %v2655_v1 = vld [vmem:[%s3590_s12 + $0x68] sm:$0xff]  }
 0x578   :  { %1506 = vmatprep.subr.bf16.mxu1 %v2589_v61  ;;  %v2653_v61 = vld [vmem:[%s3590_s12 + $0x30] sm:$0xff]  }
 0x57b   :  { %1507 = vmatpush1.bf16.msra.mxu1 %v2587_v62  ;;  %v3349_v62 = vld [vmem:[%s3590_s12 + $0xb0] sm:$0xff]  }
 0x57c   :  { %1508 = vmatprep.subr.bf16.mxu1 %v2595_v2  ;;  %v3358_v2 = vld [vmem:[%s3590_s12 + $0xe8] sm:$0xff]  }
 0x57d   :  { %2151 = vmatmul.mubr.msk.bf16.gmra.mxu1 %vm971_vm4, %v933_v3 }
 0x57f   :  { %1509 = vmatpush1.bf16.msra.mxu1 %v2593_v0 }
 0x580   :  { %1510 = vmatprep.subr.bf16.mxu1 %v2601_v4 }
 0x583   :  { %1511 = vmatpush2.bf16.msra.mxu1 %v2599_v5 }
 0x584   :  { %1512 = vmatprep.subr.bf16.mxu1 %v2607_v6 }
 0x587   :  { %1513 = vmatpush2.bf16.msra.mxu1 %v2605_v7  ;;  %v2657_v7 = vld [vmem:[%s3590_s12 + $0x28] sm:$0xff]  }
 0x588   :  { %1514 = vmatprep.subr.bf16.mxu1 %v2613_v8  ;;  %v3367_v8 = vld [vmem:[%s3590_s12 + $0xa8] sm:$0xff]  }
 0x58b   :  { %1515 = vmatpush2.bf16.msra.mxu1 %v2611_v12 }
 0x58c   :  { %1516 = vmatprep.subr.bf16.mxu1 %v2619_v13  ;;  %v2659_v13 = vld [vmem:[%s3590_s12 + $0x60] sm:$0xff]  }
 0x58f   :  { %1517 = vmatpush2.bf16.msra.mxu1 %v2617_v14  ;;  %v3376_v14 = vld [vmem:[%s3590_s12 + $0xe0] sm:$0xff]  }
 0x590   :  { %1518 = vmatprep.subr.bf16.mxu1 %v2625_v21 }
 0x593   :  { %1519 = vmatpush2.bf16.msra.mxu1 %v2623_v15 }
 0x594   :  { %1520 = vmatprep.subr.bf16.mxu1 %v2631_v16  ;;  %v2661_v16 = vld [vmem:[%s3590_s12 + $0x20] sm:$0xff]  }
 0x597   :  { %1521 = vmatpush2.bf16.msra.mxu1 %v2629_v22 }
 0x598   :  { %1522 = vmatprep.subr.bf16.mxu1 %v2637_v24  ;;  %v2663_v24 = vld [vmem:[%s3590_s12 + $0x58] sm:$0xff]  }
 0x59b   :  { %1523 = vmatpush2.bf16.msra.mxu1 %v2635_v30 }
 0x59c   :  { %1524 = vmatprep.subr.bf16.mxu1 %v2643_v32 }
 0x59f   :  { %1525 = vmatpush2.bf16.msra.mxu1 %v2641_v34 }
 0x5a0   :  { %2308 = vmatprep.subr.bf16.mxu1 %v2647_v36  ;;  %v3407_v36 = vld [vmem:[%s3590_s12 + $0x98] sm:$0xff]  }
 0x622   :  { %v1025_v28 = vpop.f32.mrf.mxu1 }
 0x623   :  { %v1026_v40 = vadd.f32 %v1025_v28, %v3316_v29 }
 0x624   :  { %v1027_v9 = vpop.f32.mrf.mxu1 }
 0x625   :  { %v1028_v38 = vadd.f32 %v1027_v9, %v3313_v27  ;;  %v1064_v47 = vmax.f32 %v1026_v40, 0.0 }
 0x626   :  { %v1029_v10 = vpop.f32.mrf.mxu1 }
 0x627   :  { %v1030_v39 = vadd.f32 %v1029_v10, %v3316_v29  ;;  %v1065_v45 = vmax.f32 %v1028_v38, 0.0 }
 0x628   :  { %v1031_v41 = vpop.f32.mrf.mxu1 }
 0x629   :  { %v1032_v42 = vadd.f32 %v1031_v41, %v3313_v27  ;;  %v1066_v43 = vmax.f32 %v1030_v39, 0.0 }
 0x62a   :  { %v1035_v44 = vpop.f32.mrf.mxu1 }
 0x62b   :  { %v1067_v46 = vmax.f32 %v1032_v42, 0.0  ;;  %v1144_v51 = vpack.c.bf16 %v1066_v43, %v1064_v47  ;;  %v1036_v57 = vadd.f32 %v1035_v44, %v3316_v29 }
 0x62c   :  { %v1037_v48 = vpop.f32.mrf.mxu1 }
 0x62d   :  { %v1145_v11 = vpack.c.bf16 %v1067_v46, %v1065_v45  ;;  %v1038_v55 = vadd.f32 %v1037_v48, %v3313_v27  ;;  %v1068_v4 = vmax.f32 %v1036_v57, 0.0  ;;  %v2673_v57 = vld [vmem:[%s3590_s12 + $0x8] sm:$0xff]  }
 0x62e   :  { %v1039_v52 = vpop.f32.mrf.mxu1 }
 0x62f   :  { %v1040_v56 = vadd.f32 %v1039_v52, %v3316_v29  ;;  %1526 = vmatprep.mubr.bf16.mxu1 %v1145_v11  ;;  %1599 = vmatprep.mubr.bf16.mxu0 %v1145_v11  ;;  %v1069_v3 = vmax.f32 %v1038_v55, 0.0  ;;  %v2667_v52 = vld [vmem:[%s3590_s12 + $0x50] sm:$0xff]   ;;  %v2671_v55 = vld [vmem:[%s3590_s12 + $0x48] sm:$0xff]  }
 0x630   :  { %v1041_v59 = vpop.f32.mrf.mxu1  ;;  %1527 = vmatmul.mubr.bf16.vlgmr.msra.gmra.mxu1 %v1144_v51  ;;  %1600 = vmatmul.mubr.bf16.vlgmr.msra.gmra.mxu0 %v1144_v51 }
 0x631   :  { %v1042_v60 = vadd.f32 %v1041_v59, %v3313_v27  ;;  %2309 = vmatpush3.bf16.msra.mxu1 %v2649_v49  ;;  %2349 = vmatpush3.bf16.msra.mxu0 %v3328_v50  ;;  %v1070_v63 = vmax.f32 %v1040_v56, 0.0  ;;  %v3439_v56 = vld [vmem:[%s3590_s12 + $0xc8] sm:$0xff]  }
 0x632   :  { %2310 = vmatprep.subr.bf16.mxu1 %v2651_v53  ;;  %2350 = vmatprep.subr.bf16.mxu0 %v3336_v54  ;;  %v3429_v53 = vld [vmem:[%s3590_s12 + $0x90] sm:$0xff]   ;;  %v3447_v59 = vld [vmem:[%s3590_s12 + $0x88] sm:$0xff]  }
 0x633   :  { %v1071_v0 = vmax.f32 %v1042_v60, 0.0  ;;  %v1146_v12 = vpack.c.bf16 %v1070_v63, %v1068_v4  ;;  %v2675_v60 = vld [vmem:[%s3590_s12 + $0x40] sm:$0xff]  }
 0x634   :  { %v2677_v63 = vld [vmem:[%s3590_s12] sm:$0xff]  }
 0x635   :  { %v1147_v5 = vpack.c.bf16 %v1071_v0, %v1069_v3  ;;  %v1045_v6 = vpop.f32.mrf.mxu1  ;;  %2311 = vmatpush3.bf16.msra.mxu1 %v2653_v61  ;;  %2351 = vmatpush3.bf16.msra.mxu0 %v3349_v62  ;;  %v3457_v61 = vld [vmem:[%s3590_s12 + $0xc0] sm:$0xff]   ;;  %v1168_v3 = vsub.s32 3, %v2960_v18 }
 0x636   :  { %2312 = vmatprep.subr.bf16.mxu1 %v2655_v1  ;;  %2352 = vmatprep.subr.bf16.mxu0 %v3358_v2  ;;  %v1046_v30 = vadd.f32 %v1045_v6, %v3316_v29  ;;  %v3465_v1 = vld [vmem:[%s3590_s12 + $0x80] sm:$0xff]  }
 0x637   :  { %v1047_v21 = vpop.f32.mrf.mxu1  ;;  %1536 = vmatprep.mubr.bf16.mxu1 %v1147_v5  ;;  %1609 = vmatprep.mubr.bf16.mxu0 %v1147_v5  ;;  %v1152_v0 = vld [vmem:[%s3589_s11] sm:$0xf] }
 0x638   :  { %1537 = vmatmul.mubr.bf16.gmra.mxu1 %v1146_v12  ;;  %1610 = vmatmul.mubr.bf16.gmra.mxu0 %v1146_v12  ;;  %v1048_v22 = vadd.f32 %v1047_v21, %v3313_v27  ;;  %v1072_v9 = vmax.f32 %v1046_v30, 0.0  ;;  %v3475_v6 = vrot.slane %v1152_v0, %v2963_v19  ;;  %v3480_v12 = vrot.slane %v1152_v0, %v2966_v20 }
 0x639   :  { %v1049_v15 = vpop.f32.mrf.mxu1  ;;  %2313 = vmatpush3.bf16.msra.mxu1 %v2657_v7  ;;  %2353 = vmatpush3.bf16.msra.mxu0 %v3367_v8  ;;  %v3477_v7 = vrot.slane %v1152_v0, %v1168_v3 }
 0x63a   :  { %v1050_v23 = vadd.f32 %v1049_v15, %v3316_v29  ;;  %2314 = vmatprep.subr.bf16.mxu1 %v2659_v13  ;;  %2354 = vmatprep.subr.bf16.mxu0 %v3376_v14  ;;  %v1073_v37 = vmax.f32 %v1048_v22, 0.0  ;;  %v3484_v13 = vrot.slane %v1152_v0, %v127_v58 }
 0x63b   :  { %v1051_v31 = vpop.f32.mrf.mxu1 }
 0x63c   :  { %v1052_v32 = vadd.f32 %v1051_v31, %v3313_v27  ;;  %v1074_v33 = vmax.f32 %v1050_v23, 0.0 }
 0x63d   :  { %v1055_v34 = vpop.f32.mrf.mxu1  ;;  %2315 = vmatpush3.bf16.msra.mxu1 %v2661_v16  ;;  %2355 = vmatpush3.bf16.msra.mxu0 %v3385_v17 }
 0x63e   :  { %v1075_v28 = vmax.f32 %v1052_v32, 0.0  ;;  %2316 = vmatprep.subr.bf16.mxu1 %v2663_v24  ;;  %2356 = vmatprep.subr.bf16.mxu0 %v3396_v25  ;;  %v1148_v39 = vpack.c.bf16 %v1074_v33, %v1072_v9  ;;  %v1056_v43 = vadd.f32 %v1055_v34, %v3316_v29 }
 0x63f   :  { %v1057_v10 = vpop.f32.mrf.mxu1 }
 0x640   :  { %v1149_v38 = vpack.c.bf16 %v1075_v28, %v1073_v37  ;;  %v1058_v41 = vadd.f32 %v1057_v10, %v3313_v27  ;;  %v1076_v11 = vmax.f32 %v1056_v43, 0.0 }
 0x641   :  { %v1059_v40 = vpop.f32.mrf.mxu1  ;;  %2317 = vmatpush3.bf16.msra.mxu1 %v2665_v35  ;;  %2357 = vmatpush3.bf16.msra.mxu0 %v3407_v36 }
 0x642   :  { %v1060_v42 = vadd.f32 %v1059_v40, %v3316_v29  ;;  %1546 = vmatprep.mubr.bf16.mxu1 %v1149_v38  ;;  %1619 = vmatprep.mubr.bf16.mxu0 %v1149_v38  ;;  %v1077_v47 = vmax.f32 %v1058_v41, 0.0  ;;  %v3421_v29 = vld [vmem:[%s3590_s12 + $0xd0] sm:$0xff]  }
 0x643   :  { %v1061_v44 = vpop.f32.mrf.mxu1  ;;  %1547 = vmatmul.mubr.bf16.gmra.mxu1 %v1148_v39  ;;  %1620 = vmatmul.mubr.bf16.gmra.mxu0 %v1148_v39 }
 0x644   :  { %v1062_v45 = vadd.f32 %v1061_v44, %v3313_v27  ;;  %v1078_v46 = vmax.f32 %v1060_v42, 0.0  ;;  %v2669_v27 = vld [vmem:[%s3590_s12 + $0x10] sm:$0xff]   ;;  %2318 = vmatprep.subr.bf16.mxu1 %v2667_v52  ;;  %2358 = vmatprep.subr.bf16.mxu0 %v3421_v29 }
 0x645   :  { %2319 = vmatpush3.bf16.msra.mxu1 %v2669_v27  ;;  %2359 = vmatpush3.bf16.msra.mxu0 %v3429_v53 }
 0x646   :  { %v1079_v48 = vmax.f32 %v1062_v45, 0.0  ;;  %v1150_v51 = vpack.c.bf16 %v1078_v46, %v1076_v11  ;;  %2320 = vmatprep.subr.bf16.mxu1 %v2671_v55  ;;  %2360 = vmatprep.subr.bf16.mxu0 %v3439_v56 }
 0x648   :  { %v1151_v49 = vpack.c.bf16 %v1079_v48, %v1077_v47 }
 0x649   :  { %2321 = vmatpush3.bf16.msra.mxu1 %v2673_v57  ;;  %2361 = vmatpush3.bf16.msra.mxu0 %v3447_v59 }
 0x64a   :  { %1556 = vmatprep.mubr.bf16.mxu1 %v1151_v49  ;;  %1629 = vmatprep.mubr.bf16.mxu0 %v1151_v49 }
 0x64b   :  { %1557 = vmatmul.mubr.bf16.gmra.mxu1 %v1150_v51  ;;  %1630 = vmatmul.mubr.bf16.gmra.mxu0 %v1150_v51 }
 0x64c   :  { %2322 = vmatprep.subr.bf16.mxu1 %v2675_v60  ;;  %2362 = vmatprep.subr.bf16.mxu0 %v3457_v61 }
 0x64d   :  { %2323 = vmatpush3.bf16.msra.mxu1 %v2677_v63  ;;  %2363 = vmatpush3.bf16.msra.mxu0 %v3465_v1 }
 0x64e   :  { %2468 = vmatprep.subr.bf16.mxu1 %v3309_v26 }
 0x6f0   :  { %v1528_v4 = vpop.f32.mrf.mxu1  ;;  %v1601_v5 = vpop.f32.mrf.mxu0 }
 0x6f1   :  { %v1529_v30 = vadd.f32 %v1528_v4, %v3480_v12  ;;  %v1602_v20 = vadd.f32 %v1601_v5, %v3484_v13 }
 0x6f2   :  { %v1530_v26 = vpop.f32.mrf.mxu1  ;;  %v1603_v21 = vpop.f32.mrf.mxu0 }
 0x6f3   :  { %v1531_v22 = vadd.f32 %v1530_v26, %v3475_v6  ;;  %v1604_v23 = vadd.f32 %v1603_v21, %v3477_v7  ;;  %v1640_v39 = vmax.f32 %v1529_v30, 0.0  ;;  %v1642_v40 = vmax.f32 %v1602_v20, 0.0 }
 0x6f4   :  { %v1532_v15 = vpop.f32.mrf.mxu1  ;;  %v1605_v16 = vpop.f32.mrf.mxu0 }
 0x6f5   :  { %v1533_v19 = vadd.f32 %v1532_v15, %v3480_v12  ;;  %v1606_v24 = vadd.f32 %v1605_v16, %v3484_v13  ;;  %v1641_v28 = vmax.f32 %v1531_v22, 0.0  ;;  %v1643_v9 = vmax.f32 %v1604_v23, 0.0 }
 0x6f6   :  { %v1534_v31 = vpop.f32.mrf.mxu1  ;;  %v1607_v18 = vpop.f32.mrf.mxu0 }
 0x6f7   :  { %v1535_v58 = vadd.f32 %v1534_v31, %v3475_v6  ;;  %v1608_v32 = vadd.f32 %v1607_v18, %v3477_v7  ;;  %v1644_v33 = vmax.f32 %v1533_v19, 0.0  ;;  %v1646_v34 = vmax.f32 %v1606_v24, 0.0 }
 0x6f8   :  { %v1538_v35 = vpop.f32.mrf.mxu1  ;;  %v1611_v37 = vpop.f32.mrf.mxu0 }
 0x6f9   :  { %v1645_v10 = vmax.f32 %v1535_v58, 0.0  ;;  %v1647_v38 = vmax.f32 %v1608_v32, 0.0  ;;  %v1736_v45 = vpack.c.bf16 %v1644_v33, %v1640_v39  ;;  %v1738_v46 = vpack.c.bf16 %v1646_v34, %v1642_v40 }
 0x6fa   :  { %v1540_v41 = vpop.f32.mrf.mxu1  ;;  %v1613_v42 = vpop.f32.mrf.mxu0  ;;  %v1539_v27 = vadd.f32 %v1538_v35, %v3480_v12  ;;  %v1612_v55 = vadd.f32 %v1611_v37, %v3484_v13 }
 0x6fb   :  { %v1737_v43 = vpack.c.bf16 %v1645_v10, %v1641_v28  ;;  %v1739_v44 = vpack.c.bf16 %v1647_v38, %v1643_v9  ;;  %v1541_v47 = vadd.f32 %v1540_v41, %v3475_v6  ;;  %v1614_v49 = vadd.f32 %v1613_v42, %v3477_v7 }
 0x6fc   :  { %v1542_v48 = vpop.f32.mrf.mxu1  ;;  %v1615_v11 = vpop.f32.mrf.mxu0  ;;  %v1648_v16 = vmax.f32 %v1539_v27, 0.0  ;;  %v1650_v22 = vmax.f32 %v1612_v55, 0.0 }
 0x6fd   :  { %v1543_v51 = vadd.f32 %v1542_v48, %v3480_v12  ;;  %v1616_v52 = vadd.f32 %v1615_v11, %v3484_v13  ;;  %1983 = vmatprep.mubr.bf16.mxu1 %v1737_v43  ;;  %2048 = vmatprep.mubr.bf16.mxu0 %v1739_v44  ;;  %v1649_v5 = vmax.f32 %v1541_v47, 0.0  ;;  %v1651_v26 = vmax.f32 %v1614_v49, 0.0 }
 0x6fe   :  { %v1544_v57 = vpop.f32.mrf.mxu1  ;;  %v1617_v60 = vpop.f32.mrf.mxu0  ;;  %1984 = vmatmul.mubr.bf16.vlgmr.msra.gmra.mxu1 %v1736_v45  ;;  %2049 = vmatmul.mubr.bf16.vlgmr.msra.gmra.mxu0 %v1738_v46 }
 0x6ff   :  { %v1545_v63 = vadd.f32 %v1544_v57, %v3475_v6  ;;  %v1618_v3 = vadd.f32 %v1617_v60, %v3477_v7  ;;  %2476 = vmatpush3.bf16.msra.mxu1 %v3328_v50  ;;  %v1652_v0 = vmax.f32 %v1543_v51, 0.0  ;;  %v1654_v4 = vmax.f32 %v1616_v52, 0.0 }
 0x700   :  { %2469 = vmatprep.subr.bf16.mxu1 %v3336_v54 }
 0x701   :  { %v1653_v21 = vmax.f32 %v1545_v63, 0.0  ;;  %v1655_v15 = vmax.f32 %v1618_v3, 0.0  ;;  %v1740_v20 = vpack.c.bf16 %v1652_v0, %v1648_v16  ;;  %v1742_v31 = vpack.c.bf16 %v1654_v4, %v1650_v22 }
 0x703   :  { %v1741_v23 = vpack.c.bf16 %v1653_v21, %v1649_v5  ;;  %v1743_v19 = vpack.c.bf16 %v1655_v15, %v1651_v26  ;;  %v1548_v24 = vpop.f32.mrf.mxu1  ;;  %v1621_v30 = vpop.f32.mrf.mxu0  ;;  %2477 = vmatpush3.bf16.msra.mxu1 %v3349_v62 }
 0x704   :  { %2470 = vmatprep.subr.bf16.mxu1 %v3358_v2  ;;  %v1549_v2 = vadd.f32 %v1548_v24, %v3480_v12  ;;  %v1622_v35 = vadd.f32 %v1621_v30, %v3484_v13 }
 0x705   :  { %v1550_v50 = vpop.f32.mrf.mxu1  ;;  %v1623_v18 = vpop.f32.mrf.mxu0  ;;  %1991 = vmatprep.mubr.bf16.mxu1 %v1741_v23  ;;  %2056 = vmatprep.mubr.bf16.mxu0 %v1743_v19 }
 0x706   :  { %1992 = vmatmul.mubr.bf16.gmra.mxu1 %v1740_v20  ;;  %2057 = vmatmul.mubr.bf16.gmra.mxu0 %v1742_v31  ;;  %v1551_v32 = vadd.f32 %v1550_v50, %v3475_v6  ;;  %v1624_v33 = vadd.f32 %v1623_v18, %v3477_v7  ;;  %v1656_v44 = vmax.f32 %v1549_v2, 0.0  ;;  %v1658_v45 = vmax.f32 %v1622_v35, 0.0 }
 0x707   :  { %v1552_v54 = vpop.f32.mrf.mxu1  ;;  %v1625_v58 = vpop.f32.mrf.mxu0  ;;  %2478 = vmatpush3.bf16.msra.mxu1 %v3367_v8 }
 0x708   :  { %v1553_v62 = vadd.f32 %v1552_v54, %v3480_v12  ;;  %v1626_v34 = vadd.f32 %v1625_v58, %v3484_v13  ;;  %2471 = vmatprep.subr.bf16.mxu1 %v3376_v14  ;;  %v1657_v41 = vmax.f32 %v1551_v32, 0.0  ;;  %v1659_v42 = vmax.f32 %v1624_v33, 0.0 }
 0x709   :  { %v1554_v37 = vpop.f32.mrf.mxu1  ;;  %v1627_v28 = vpop.f32.mrf.mxu0 }
 0x70a   :  { %v1555_v9 = vadd.f32 %v1554_v37, %v3475_v6  ;;  %v1628_v8 = vadd.f32 %v1627_v28, %v3477_v7  ;;  %v1660_v10 = vmax.f32 %v1553_v62, 0.0  ;;  %v1662_v38 = vmax.f32 %v1626_v34, 0.0 }
 0x70b   :  { %v1558_v39 = vpop.f32.mrf.mxu1  ;;  %v1631_v40 = vpop.f32.mrf.mxu0  ;;  %2479 = vmatpush3.bf16.msra.mxu1 %v3385_v17 }
 0x70c   :  { %v1661_v43 = vmax.f32 %v1555_v9, 0.0  ;;  %v1663_v14 = vmax.f32 %v1628_v8, 0.0  ;;  %2472 = vmatprep.subr.bf16.mxu1 %v3396_v25  ;;  %v1744_v49 = vpack.c.bf16 %v1660_v10, %v1656_v44  ;;  %v1746_v51 = vpack.c.bf16 %v1662_v38, %v1658_v45 }
 0x70d   :  { %v1560_v46 = vpop.f32.mrf.mxu1  ;;  %v1633_v47 = vpop.f32.mrf.mxu0  ;;  %v1559_v25 = vadd.f32 %v1558_v39, %v3480_v12 }
 0x70e   :  { %v1745_v48 = vpack.c.bf16 %v1661_v43, %v1657_v41  ;;  %v1747_v11 = vpack.c.bf16 %v1663_v14, %v1659_v42  ;;  %v1561_v17 = vadd.f32 %v1560_v46, %v3475_v6  ;;  %v1634_v63 = vadd.f32 %v1633_v47, %v3477_v7 }
 0x70f   :  { %v1562_v52 = vpop.f32.mrf.mxu1  ;;  %v1635_v27 = vpop.f32.mrf.mxu0  ;;  %2480 = vmatpush3.bf16.msra.mxu1 %v3407_v36 }
 0x710   :  { %v1563_v55 = vadd.f32 %v1562_v52, %v3480_v12  ;;  %1999 = vmatprep.mubr.bf16.mxu1 %v1745_v48  ;;  %2064 = vmatprep.mubr.bf16.mxu0 %v1747_v11  ;;  %v1665_v4 = vmax.f32 %v1561_v17, 0.0  ;;  %v1664_v12 = vmax.f32 %v1559_v25, 0.0  ;;  %v1667_v21 = vmax.f32 %v1634_v63, 0.0 }
 0x711   :  { %v1564_v57 = vpop.f32.mrf.mxu1  ;;  %v1637_v60 = vpop.f32.mrf.mxu0  ;;  %2000 = vmatmul.mubr.bf16.gmra.mxu1 %v1744_v49  ;;  %2065 = vmatmul.mubr.bf16.gmra.mxu0 %v1746_v51  ;;  %v1636_v22 = vadd.f32 %v1635_v27, %v3484_v13 }
 0x712   :  { %v1565_v3 = vadd.f32 %v1564_v57, %v3475_v6  ;;  %v1638_v0 = vadd.f32 %v1637_v60, %v3477_v7  ;;  %2473 = vmatprep.subr.bf16.mxu1 %v3421_v29  ;;  %v1668_v36 = vmax.f32 %v1563_v55, 0.0  ;;  %v1632_v29 = vadd.f32 %v1631_v40, %v3484_v13 }
 0x713   :  { %2481 = vmatpush3.bf16.msra.mxu1 %v3429_v53  ;;  %v1670_v53 = vmax.f32 %v1636_v22, 0.0 }
 0x714   :  { %v1669_v5 = vmax.f32 %v1565_v3, 0.0  ;;  %v1671_v26 = vmax.f32 %v1638_v0, 0.0  ;;  %2474 = vmatprep.subr.bf16.mxu1 %v3439_v56  ;;  %v1748_v16 = vpack.c.bf16 %v1668_v36, %v1664_v12  ;;  %v1666_v56 = vmax.f32 %v1632_v29, 0.0 }
 0x716   :  { %v1749_v15 = vpack.c.bf16 %v1669_v5, %v1665_v4  ;;  %v1751_v6 = vpack.c.bf16 %v1671_v26, %v1667_v21  ;;  %v1750_v7 = vpack.c.bf16 %v1670_v53, %v1666_v56 }
 0x717   :  { %2482 = vmatpush3.bf16.msra.mxu1 %v3447_v59  ;;  %v3536_v59 = vld [vmem:[%s3591_s13] ss:$0 sm:$0xff] }
 0x718   :  { %2007 = vmatprep.mubr.bf16.mxu1 %v1749_v15  ;;  %2475 = vmatprep.subr.bf16.mxu1 %v3457_v61 }
 0x719   :  { %2008 = vmatmul.mubr.bf16.gmra.mxu1 %v1748_v16 }
 0x71a   :  { %2072 = vmatprep.mubr.bf16.mxu1 %v1751_v6 }
 0x71b   :  { %2483 = vmatpush3.bf16.msra.mxu1 %v3465_v1 }
 0x721   :  { %2073 = vmatmul.mubr.bf16.vlgmr.msra.gmra.mxu1 %v1750_v7 }
 0x7be   :  { %v2324_v23 = vpop.f32.mrf.mxu1  ;;  %v2364_v19 = vpop.f32.mrf.mxu0 }
 0x7c0   :  { %v2325_v24 = vpop.f32.mrf.mxu1  ;;  %v2365_v30 = vpop.f32.mrf.mxu0 }
 0x7c1   :  { %v2326_v61 = vadd.f32 %v2325_v24, %v2324_v23  ;;  %v2366_v50 = vadd.f32 %v2365_v30, %v2364_v19 }
 0x7c2   :  { %v2327_v20 = vpop.f32.mrf.mxu1  ;;  %v2367_v13 = vpop.f32.mrf.mxu0 }
 0x7c3   :  { %v1986_v31 = vadd.f32 %v2326_v61, %v3536_v59 }
 0x7c4   :  { %v2328_v1 = vpop.f32.mrf.mxu1  ;;  %v2368_v18 = vpop.f32.mrf.mxu0 }
 0x7c5   :  { %v2051_v54 = vadd.f32 %v2366_v50, %v1986_v31  ;;  %v2329_v58 = vadd.f32 %v2328_v1, %v2327_v20  ;;  %v2369_v34 = vadd.f32 %v2368_v18, %v2367_v13 }
 0x7c6   :  { %v2330_v32 = vpop.f32.mrf.mxu1  ;;  %v2370_v33 = vpop.f32.mrf.mxu0 }
 0x7c7   :  { %2082 = vst.msk [vmem:[%s3592_s14] sm:$0xff] %vm2081_vm5, %v2051_v54  ;;  %v1989_v62 = vadd.f32 %v2329_v58, %v3536_v59 }
 0x7c8   :  { %v2331_v2 = vpop.f32.mrf.mxu1  ;;  %v2371_v35 = vpop.f32.mrf.mxu0 }
 0x7c9   :  { %v2054_v37 = vadd.f32 %v2369_v34, %v1989_v62  ;;  %v2332_v28 = vadd.f32 %v2331_v2, %v2330_v32  ;;  %v2372_v38 = vadd.f32 %v2371_v35, %v2370_v33 }
 0x7ca   :  { %v2333_v9 = vpop.f32.mrf.mxu1  ;;  %v2373_v8 = vpop.f32.mrf.mxu0 }
 0x7cb   :  { %2083 = vst.msk [vmem:[%s3592_s14 + $0x8] sm:$0xff] %vm2081_vm5, %v2054_v37  ;;  %v1994_v10 = vadd.f32 %v2332_v28, %v3536_v59 }
 0x7cc   :  { %v2334_v39 = vpop.f32.mrf.mxu1  ;;  %v2374_v40 = vpop.f32.mrf.mxu0 }
 0x7cd   :  { %v2059_v41 = vadd.f32 %v2372_v38, %v1994_v10  ;;  %v2335_v42 = vadd.f32 %v2334_v39, %v2333_v9  ;;  %v2375_v14 = vadd.f32 %v2374_v40, %v2373_v8 }
 0x7cf   :  { %2084 = vst.msk [vmem:[%s3592_s14 + $0x10] sm:$0xff] %vm2081_vm5, %v2059_v41  ;;  %v1997_v43 = vadd.f32 %v2335_v42, %v3536_v59 }
 0x7d1   :  { %v2062_v44 = vadd.f32 %v2375_v14, %v1997_v43  ;;  %v2336_v45 = vpop.f32.mrf.mxu1  ;;  %v2376_v46 = vpop.f32.mrf.mxu0 }
 0x7d3   :  { %2085 = vst.msk [vmem:[%s3592_s14 + $0x18] sm:$0xff] %vm2081_vm5, %v2062_v44  ;;  %v2337_v47 = vpop.f32.mrf.mxu1  ;;  %v2377_v48 = vpop.f32.mrf.mxu0 }
 0x7d4   :  { %v2338_v11 = vadd.f32 %v2337_v47, %v2336_v45  ;;  %v2378_v27 = vadd.f32 %v2377_v48, %v2376_v46 }
 0x7d5   :  { %v2339_v49 = vpop.f32.mrf.mxu1  ;;  %v2379_v51 = vpop.f32.mrf.mxu0 }
 0x7d6   :  { %v2002_v52 = vadd.f32 %v2338_v11, %v3536_v59 }
 0x7d7   :  { %v2340_v17 = vpop.f32.mrf.mxu1  ;;  %v2380_v55 = vpop.f32.mrf.mxu0 }
 0x7d8   :  { %v2067_v25 = vadd.f32 %v2378_v27, %v2002_v52  ;;  %v2341_v57 = vadd.f32 %v2340_v17, %v2339_v49  ;;  %v2381_v3 = vadd.f32 %v2380_v55, %v2379_v51 }
 0x7d9   :  { %v2342_v60 = vpop.f32.mrf.mxu1 }
 0x7da   :  { %2086 = vst.msk [vmem:[%s3592_s14 + $0x20] sm:$0xff] %vm2081_vm5, %v2067_v25  ;;  %v2005_v63 = vadd.f32 %v2341_v57, %v3536_v59 }
 0x7db   :  { %v2343_v0 = vpop.f32.mrf.mxu1 }
 0x7dc   :  { %v2070_v36 = vadd.f32 %v2381_v3, %v2005_v63  ;;  %v2344_v26 = vadd.f32 %v2343_v0, %v2342_v60 }
 0x7dd   :  { %v2345_v4 = vpop.f32.mrf.mxu1 }
 0x7de   :  { %2087 = vst.msk [vmem:[%s3592_s14 + $0x28] sm:$0xff] %vm2081_vm5, %v2070_v36  ;;  %v2010_v15 = vadd.f32 %v2344_v26, %v3536_v59 }
 0x7df   :  { %v2346_v5 = vpop.f32.mrf.mxu1 }
 0x7e0   :  { %v2347_v16 = vadd.f32 %v2346_v5, %v2345_v4 }
 0x7e1   :  { %v2382_v12 = vpop.f32.mrf.mxu1 }
 0x7e2   :  { %v2013_v56 = vadd.f32 %v2347_v16, %v3536_v59 }
 0x7e3   :  { %v2383_v21 = vpop.f32.mrf.mxu1 }
 0x7e4   :  { %v2384_v22 = vadd.f32 %v2383_v21, %v2382_v12 }
 0x7e5   :  { %v2385_v6 = vpop.f32.mrf.mxu1 }
 0x7e6   :  { %v2075_v29 = vadd.f32 %v2384_v22, %v2010_v15 }
 0x7e7   :  { %v2386_v53 = vpop.f32.mrf.mxu1 }
 0x7e8   :  { %2088 = vst.msk [vmem:[%s3592_s14 + $0x30] sm:$0xff] %vm2081_vm5, %v2075_v29  ;;  %v2387_v7 = vadd.f32 %v2386_v53, %v2385_v6 }
 0x7ea   :  { %v2078_v23 = vadd.f32 %v2387_v7, %v2013_v56 }
 0x7ec   :  { %2089 = vst.msk [vmem:[%s3592_s14 + $0x38] sm:$0xff] %vm2081_vm5, %v2078_v23 }
 0x7ed   :  { %2094 = vsyncpa [#allocation3], 1 }
 0x7ee   :  { %2095 = vsyncpa [#allocation5], 1 }
 0x7ef   :  { %2096 = vsyncpa [#allocation8], 1 }

</bundles_post_ra>
